<compile_context>
chip_gen: v7x
topology: tpu7x:2x2x1
jax: 0.10.0
libtpu: 0.0.40
codegen_flags: <defaults>
</compile_context>

<pallas_src>
import functools
import math

import jax
import jax.numpy as jnp
from jax import lax
from jax.experimental import pallas as pl
from jax.experimental.pallas import tpu as pltpu


def _unit_tcn_kernel(x_ref, w_ref, shift_ref, o_ref, xpad_ref, xcat_ref,
                     *, kernel_size, stride, pad, T, V, cin, cs):
    # x_ref:     (1, T*V, Cin)            bf16  [stride==1]  or (1, T, V, Cin) [stride>1]
    # w_ref:     (K*Cs, Cout_pad)         bf16, BN scale folded in, zero rows in slot pad
    # shift_ref: (1, Cout_pad)            f32 folded BN/bias shift
    # o_ref:     (1, t_tile*V, Cout_pad)  bf16 flat output tile
    # xpad_ref:  (T_need*V, Cin) or (T_need, V, Cin) bf16 zero-edged padded copy of x
    # xcat_ref:  (t_tile*V, K*Cs)         bf16 im2col operand
    R = o_ref.shape[1]            # t_tile * V rows
    t_tile = R // V

    # --- once per batch element: build the temporally zero-padded copy of x in VMEM
    #     (VMEM->VMEM only; requires the t grid axis to run sequentially -> "arbitrary")
    @pl.when(pl.program_id(1) == 0)
    def _fill_padded_x():
        if stride == 1:
            T_need = xpad_ref.shape[0] // V
            if pad > 0:
                xpad_ref[pl.ds(0, pad * V), :] = jnp.zeros((pad * V, cin), xpad_ref.dtype)
            tail = T_need - (pad + T)
            if tail > 0:
                xpad_ref[pl.ds((pad + T) * V, tail * V), :] = jnp.zeros(
                    (tail * V, cin), xpad_ref.dtype)
            xpad_ref[pl.ds(pad * V, T * V), :] = x_ref[0]
        else:
            T_need = xpad_ref.shape[0]
            if pad > 0:
                xpad_ref[pl.ds(0, pad), :, :] = jnp.zeros((pad, V, cin), xpad_ref.dtype)
            tail = T_need - (pad + T)
            if tail > 0:
                xpad_ref[pl.ds(pad + T, tail), :, :] = jnp.zeros(
                    (tail, V, cin), xpad_ref.dtype)
            xpad_ref[pl.ds(pad, T), :, :] = x_ref[0]
        if cs != cin:
            # Zero once so the (cin..cs) pad lanes of every tap slot contribute exactly
            # 0 to the matmul (the matching weight rows are zero).
            xcat_ref[...] = jnp.zeros_like(xcat_ref)

    # --- build the (R, K*Cs) im2col operand; tap k goes to lane-tile-aligned slot k*Cs
    t0 = pl.program_id(1) * (t_tile * stride)   # first padded-time index of this tile
    v_align = V & (-V)                          # largest power-of-two divisor of V
    for k in range(kernel_size):                # small static tap count -> unrolled
        if stride == 1:
            start = (t0 + k) * V
            if v_align > 1:
                start = pl.multiple_of(start, v_align)
            xk = xpad_ref[pl.ds(start, R), :]                              # (R, Cin)
        else:
            xk = xpad_ref[pl.ds(t0 + k, t_tile, stride=stride), :, :]      # (t_tile, V, Cin)
            xk = xk.reshape(R, cin)
        xcat_ref[:, pl.ds(k * cs, cin)] = xk

    # --- single MXU contraction over K*Cs, fused BN shift, lane-dense bf16 store
    y = jnp.dot(xcat_ref[...], w_ref[...], preferred_element_type=jnp.float32)
    o_ref[0] = (y + shift_ref[0]).astype(o_ref.dtype)


def unit_tcn_forward(x_nchw, weight, conv_bias, bn_gamma, bn_beta, bn_mean, bn_var,
                     *, kernel_size=5, stride=1, eps=1e-5):
    """Pallas implementation of unit_tcn.forward. x_nchw: (N, Cin, T, V) float32."""
    N, Cin, T, V = x_nchw.shape
    Cout = weight.shape[0]
    K = kernel_size
    pad = (K - 1) // 2
    T_out = (T + 2 * pad - K) // stride + 1

    Cout_pad = ((Cout + 127) // 128) * 128       # lane-dense output
    Cs = ((Cin + 127) // 128) * 128              # lane-tile-aligned per-tap slot width

    # Balanced T tiling (tile <= 128 output times); pad T_out so every tile is full.
    n_t = -(-T_out // 128)
    t_tile = -(-T_out // n_t)
    if n_t > 1:
        t_tile = ((t_tile + 15) // 16) * 16      # keep the output block sublane-aligned
        n_t = -(-T_out // t_tile)
    T_out_pad = n_t * t_tile
    R = t_tile * V

    # Padded-time rows the kernel may touch (conv pad + tail-tile slack, and at least
    # enough to hold the real data).
    T_need = max((T_out_pad - 1) * stride + K, T + 2 * pad)

    # NCHW -> (N, T, V, Cin) bf16; flatten (T, V) when stride == 1 (fast path).
    x = jnp.transpose(x_nchw, (0, 2, 3, 1)).astype(jnp.bfloat16)
    if stride == 1:
        x = x.reshape(N, T * V, Cin)
        x_spec = pl.BlockSpec((1, T * V, Cin), lambda n, t: (n, 0, 0))
        xpad_scratch = pltpu.VMEM((T_need * V, Cin), jnp.bfloat16)
    else:
        x_spec = pl.BlockSpec((1, T, V, Cin), lambda n, t: (n, 0, 0, 0))
        xpad_scratch = pltpu.VMEM((T_need, V, Cin), jnp.bfloat16)

    # Fold eval-mode BN scale into the weights (f32 before the bf16 cast); keep only the
    # per-channel shift for the epilogue.
    scale = bn_gamma / jnp.sqrt(bn_var + eps)                         # (Cout,) f32
    shift = (bn_beta + (conv_bias - bn_mean) * scale).astype(jnp.float32)
    shift = jnp.pad(shift, (0, Cout_pad - Cout)).reshape(1, Cout_pad)

    # (Cout, Cin, K, 1) -> (K, Cin, Cout) -> fold scale -> pad slots/Cout -> (K*Cs, Cout_pad)
    w = jnp.transpose(weight[:, :, :, 0], (2, 1, 0)) * scale[None, None, :]
    w = jnp.pad(w, ((0, 0), (0, Cs - Cin), (0, Cout_pad - Cout)))
    w = w.reshape(K * Cs, Cout_pad).astype(jnp.bfloat16)

    kernel = functools.partial(_unit_tcn_kernel, kernel_size=K, stride=stride,
                               pad=pad, T=T, V=V, cin=Cin, cs=Cs)

    # VMEM budget from the actual blocks (double-buffered inputs/outputs + scratch).
    need = (2 * T * V * Cin * 2                      # x block x2 buffers (bf16)
            + 2 * R * Cout_pad * 2                   # out block x2 buffers (bf16)
            + 2 * K * Cs * Cout_pad * 2              # weights x2 (bf16)
            + 2 * Cout_pad * 4                       # shift
            + T_need * V * Cin * 2                   # xpad scratch
            + R * K * Cs * 2)                        # xcat scratch
    vmem_limit = int(min(max(2 * need, 32 << 20), 100 << 20))

    out_flat = pl.pallas_call(
        kernel,
        out_shape=jax.ShapeDtypeStruct((N, T_out_pad * V, Cout_pad), jnp.bfloat16),
        grid_spec=pltpu.PrefetchScalarGridSpec(
            num_scalar_prefetch=0,
            grid=(N, n_t),
            in_specs=[
                x_spec,                                                   # resident per n
                pl.BlockSpec((K * Cs, Cout_pad), lambda n, t: (0, 0)),
                pl.BlockSpec((1, Cout_pad), lambda n, t: (0, 0)),
            ],
            out_specs=pl.BlockSpec((1, R, Cout_pad), lambda n, t: (n, t, 0)),
            scratch_shapes=[xpad_scratch,
                            pltpu.VMEM((R, K * Cs), jnp.bfloat16)]),
        compiler_params=pltpu.CompilerParams(
            # t must be "arbitrary": the in-kernel padded-x scratch is filled at t == 0
            # and reused across the t tiles of the same batch element.
            dimension_semantics=("parallel", "arbitrary"),
            vmem_limit_bytes=vmem_limit),
    )(x, w, shift)

    # Drop the T_out / Cout padding and go back to PyTorch's NCHW f32 at the boundary.
    out = out_flat[:, :T_out * V, :Cout].reshape(N, T_out, V, Cout)
    return jnp.transpose(out, (0, 3, 1, 2)).astype(jnp.float32)


def _reference(x_nchw, weight, conv_bias, bn_gamma, bn_beta, bn_mean, bn_var,
               *, kernel_size=5, stride=1, eps=1e-5):
    pad = (kernel_size - 1) // 2
    y = lax.conv_general_dilated(
        x_nchw.astype(jnp.float32), weight.astype(jnp.float32),
        window_strides=(stride, 1), padding=[(pad, pad), (0, 0)],
        dimension_numbers=("NCHW", "OIHW", "NCHW"),
    )
    y = y + conv_bias[None, :, None, None]
    y = (y - bn_mean[None, :, None, None]) / jnp.sqrt(bn_var[None, :, None, None] + eps)
    return y * bn_gamma[None, :, None, None] + bn_beta[None, :, None, None]


if __name__ == "__main__":
    key = jax.random.PRNGKey(0)
    N, Cin, Cout, T, V = 2, 4, 8, 16, 16
    kernel_size, stride = 5, 1

    k_x, k_w = jax.random.split(key)
    # Input (NCHW, matching the PyTorch module's convention).
    x = jax.random.normal(k_x, (N, Cin, T, V), dtype=jnp.float32)

    # Conv2d(Cin, Cout, kernel_size=(K, 1)) weight, kaiming_normal_(mode='fan_out'):
    # std = sqrt(2 / fan_out), fan_out = Cout * K * 1.  Bias initialized to 0.
    fan_out = Cout * kernel_size * 1
    w = jax.random.normal(k_w, (Cout, Cin, kernel_size, 1), dtype=jnp.float32)
    w = w * math.sqrt(2.0 / fan_out)
    conv_bias = jnp.zeros((Cout,), jnp.float32)

    # BatchNorm2d params after bn_init(bn, 1): weight=1, bias=0; fresh running stats.
    bn_gamma = jnp.ones((Cout,), jnp.float32)
    bn_beta = jnp.zeros((Cout,), jnp.float32)
    bn_mean = jnp.zeros((Cout,), jnp.float32)
    bn_var = jnp.ones((Cout,), jnp.float32)

    out = unit_tcn_forward(x, w, conv_bias, bn_gamma, bn_beta, bn_mean, bn_var,
                           kernel_size=kernel_size, stride=stride)
    out = jax.block_until_ready(out)

    ref = _reference(x, w, conv_bias, bn_gamma, bn_beta, bn_mean, bn_var,
                     kernel_size=kernel_size, stride=stride)
    assert out.shape == ref.shape == (N, Cout, T, V), (out.shape, ref.shape)
    # bf16 MXU operands + bf16 output vs f32 reference -> relaxed tolerance.
    assert jnp.allclose(out, ref, atol=5e-2, rtol=5e-2), float(jnp.abs(out - ref).max())

    print("KERNEL_OK")
</pallas_src>

<mosaic_0001>
module attributes {stable_mosaic.version = 11 : i64} {
  func.func @_unit_tcn_kernel(%arg0: i32, %arg1: i32, %arg2: memref<1x256x4xbf16, #tpu.memory_space<vmem>>, %arg3: memref<640x128xbf16, #tpu.memory_space<vmem>>, %arg4: memref<1x128xf32, #tpu.memory_space<vmem>>, %arg5: memref<1x256x128xbf16, #tpu.memory_space<vmem>>, %arg6: memref<320x4xbf16, #tpu.memory_space<vmem>>, %arg7: memref<256x640xbf16, #tpu.memory_space<vmem>>) attributes {dimension_semantics = [#tpu.dimension_semantics<parallel>, #tpu.dimension_semantics<arbitrary>], iteration_bounds = array<i64: 2, 1>, scalar_prefetch = 0 : i64, scratch_operands = 2 : i64, tpu.core_type = #tpu.core_type<tc>, window_params = [{transform_indices = @transform_0, window_bounds = array<i64: 1, 256, 4>}, {pipeline_mode = #tpu.pipeline_mode<synchronous>, transform_indices = @transform_1, window_bounds = array<i64: 640, 128>}, {pipeline_mode = #tpu.pipeline_mode<synchronous>, transform_indices = @transform_2, window_bounds = array<i64: 1, 128>}, {transform_indices = @transform_3, window_bounds = array<i64: 1, 256, 128>}]} {
    %c0_i32 = arith.constant 0 : i32
    %0 = arith.cmpi eq, %arg1, %c0_i32 : i32
    %1 = arith.extui %0 : i1 to i32
    %c0_i32_0 = arith.constant 0 : i32
    %2 = arith.cmpi ne, %1, %c0_i32_0 : i32
    scf.if %2 {
      %cst_26 = arith.constant 0.000000e+00 : bf16
      %46 = vector.broadcast %cst_26 : bf16 to vector<32x4xbf16>
      %c0_27 = arith.constant 0 : index
      %c0_28 = arith.constant 0 : index
      %47 = vector.load %arg6[%c0_27, %c0_28] : memref<320x4xbf16, #tpu.memory_space<vmem>>, vector<32x4xbf16>
      tpu.vector_store %arg6[%c0_27, %c0_28], %46 {strides = array<i32>} : memref<320x4xbf16, #tpu.memory_space<vmem>>, vector<32x4xbf16>,
      %cst_29 = arith.constant 0.000000e+00 : bf16
      %48 = vector.broadcast %cst_29 : bf16 to vector<32x4xbf16>
      %c288 = arith.constant 288 : index
      %c0_30 = arith.constant 0 : index
      %49 = vector.load %arg6[%c288, %c0_30] : memref<320x4xbf16, #tpu.memory_space<vmem>>, vector<32x4xbf16>
      tpu.vector_store %arg6[%c288, %c0_30], %48 {strides = array<i32>} : memref<320x4xbf16, #tpu.memory_space<vmem>>, vector<32x4xbf16>,
      %c0_31 = arith.constant 0 : index
      %c0_32 = arith.constant 0 : index
      %c0_33 = arith.constant 0 : index
      %50 = vector.load %arg2[%c0_31, %c0_32, %c0_33] : memref<1x256x4xbf16, #tpu.memory_space<vmem>>, vector<1x256x4xbf16>
      %51 = vector.shape_cast %50 : vector<1x256x4xbf16> to vector<256x4xbf16>
      %c32 = arith.constant 32 : index
      %c0_34 = arith.constant 0 : index
      %52 = vector.load %arg6[%c32, %c0_34] : memref<320x4xbf16, #tpu.memory_space<vmem>>, vector<256x4xbf16>
      tpu.vector_store %arg6[%c32, %c0_34], %51 {strides = array<i32>} : memref<320x4xbf16, #tpu.memory_space<vmem>>, vector<256x4xbf16>,
      %cst_35 = arith.constant 0.000000e+00 : bf16
      %53 = vector.broadcast %cst_35 : bf16 to vector<256x640xbf16>
      %c0_36 = arith.constant 0 : index
      %c0_37 = arith.constant 0 : index
      %54 = vector.load %arg7[%c0_36, %c0_37] : memref<256x640xbf16, #tpu.memory_space<vmem>>, vector<256x640xbf16>
      tpu.vector_store %arg7[%c0_36, %c0_37], %53 {strides = array<i32>} : memref<256x640xbf16, #tpu.memory_space<vmem>>, vector<256x640xbf16>,
    } else {
    }
    %c16_i32 = arith.constant 16 : i32
    %3 = arith.muli %arg1, %c16_i32 : i32
    %c0_i32_1 = arith.constant 0 : i32
    %4 = arith.addi %3, %c0_i32_1 : i32
    %c16_i32_2 = arith.constant 16 : i32
    %5 = arith.muli %4, %c16_i32_2 : i32
    %6 = tpu.assume_multiple %5, 16 : i32
    %7 = arith.index_cast %6 : i32 to index
    %c0 = arith.constant 0 : index
    %8 = vector.load %arg6[%7, %c0] : memref<320x4xbf16, #tpu.memory_space<vmem>>, vector<256x4xbf16>
    %c0_3 = arith.constant 0 : index
    %c0_4 = arith.constant 0 : index
    %9 = vector.load %arg7[%c0_3, %c0_4] : memref<256x640xbf16, #tpu.memory_space<vmem>>, vector<256x4xbf16>
    tpu.vector_store %arg7[%c0_3, %c0_4], %8 {strides = array<i32>} : memref<256x640xbf16, #tpu.memory_space<vmem>>, vector<256x4xbf16>,
    %c1_i32 = arith.constant 1 : i32
    %10 = arith.addi %3, %c1_i32 : i32
    %c16_i32_5 = arith.constant 16 : i32
    %11 = arith.muli %10, %c16_i32_5 : i32
    %12 = tpu.assume_multiple %11, 16 : i32
    %13 = arith.index_cast %12 : i32 to index
    %c0_6 = arith.constant 0 : index
    %14 = vector.load %arg6[%13, %c0_6] : memref<320x4xbf16, #tpu.memory_space<vmem>>, vector<256x4xbf16>
    %c0_7 = arith.constant 0 : index
    %c128 = arith.constant 128 : index
    %15 = vector.load %arg7[%c0_7, %c128] : memref<256x640xbf16, #tpu.memory_space<vmem>>, vector<256x4xbf16>
    tpu.vector_store %arg7[%c0_7, %c128], %14 {strides = array<i32>} : memref<256x640xbf16, #tpu.memory_space<vmem>>, vector<256x4xbf16>,
    %c2_i32 = arith.constant 2 : i32
    %16 = arith.addi %3, %c2_i32 : i32
    %c16_i32_8 = arith.constant 16 : i32
    %17 = arith.muli %16, %c16_i32_8 : i32
    %18 = tpu.assume_multiple %17, 16 : i32
    %19 = arith.index_cast %18 : i32 to index
    %c0_9 = arith.constant 0 : index
    %20 = vector.load %arg6[%19, %c0_9] : memref<320x4xbf16, #tpu.memory_space<vmem>>, vector<256x4xbf16>
    %c0_10 = arith.constant 0 : index
    %c256 = arith.constant 256 : index
    %21 = vector.load %arg7[%c0_10, %c256] : memref<256x640xbf16, #tpu.memory_space<vmem>>, vector<256x4xbf16>
    tpu.vector_store %arg7[%c0_10, %c256], %20 {strides = array<i32>} : memref<256x640xbf16, #tpu.memory_space<vmem>>, vector<256x4xbf16>,
    %c3_i32 = arith.constant 3 : i32
    %22 = arith.addi %3, %c3_i32 : i32
    %c16_i32_11 = arith.constant 16 : i32
    %23 = arith.muli %22, %c16_i32_11 : i32
    %24 = tpu.assume_multiple %23, 16 : i32
    %25 = arith.index_cast %24 : i32 to index
    %c0_12 = arith.constant 0 : index
    %26 = vector.load %arg6[%25, %c0_12] : memref<320x4xbf16, #tpu.memory_space<vmem>>, vector<256x4xbf16>
    %c0_13 = arith.constant 0 : index
    %c384 = arith.constant 384 : index
    %27 = vector.load %arg7[%c0_13, %c384] : memref<256x640xbf16, #tpu.memory_space<vmem>>, vector<256x4xbf16>
    tpu.vector_store %arg7[%c0_13, %c384], %26 {strides = array<i32>} : memref<256x640xbf16, #tpu.memory_space<vmem>>, vector<256x4xbf16>,
    %c4_i32 = arith.constant 4 : i32
    %28 = arith.addi %3, %c4_i32 : i32
    %c16_i32_14 = arith.constant 16 : i32
    %29 = arith.muli %28, %c16_i32_14 : i32
    %30 = tpu.assume_multiple %29, 16 : i32
    %31 = arith.index_cast %30 : i32 to index
    %c0_15 = arith.constant 0 : index
    %32 = vector.load %arg6[%31, %c0_15] : memref<320x4xbf16, #tpu.memory_space<vmem>>, vector<256x4xbf16>
    %c0_16 = arith.constant 0 : index
    %c512 = arith.constant 512 : index
    %33 = vector.load %arg7[%c0_16, %c512] : memref<256x640xbf16, #tpu.memory_space<vmem>>, vector<256x4xbf16>
    tpu.vector_store %arg7[%c0_16, %c512], %32 {strides = array<i32>} : memref<256x640xbf16, #tpu.memory_space<vmem>>, vector<256x4xbf16>,
    %c0_17 = arith.constant 0 : index
    %c0_18 = arith.constant 0 : index
    %34 = vector.load %arg7[%c0_17, %c0_18] : memref<256x640xbf16, #tpu.memory_space<vmem>>, vector<256x640xbf16>
    %c0_19 = arith.constant 0 : index
    %c0_20 = arith.constant 0 : index
    %35 = vector.load %arg3[%c0_19, %c0_20] : memref<640x128xbf16, #tpu.memory_space<vmem>>, vector<640x128xbf16>
    %cst = arith.constant dense<0.000000e+00> : vector<256x128xf32>
    %36 = tpu.matmul %34, %35, %cst {dimension_numbers = #tpu.dot_dimension_numbers<[1], [0], [0], [1], [0, 0, 1, 1], [], []>} : vector<256x640xbf16>, vector<640x128xbf16>, vector<256x128xf32> -> vector<256x128xf32>
    %c0_21 = arith.constant 0 : index
    %c0_22 = arith.constant 0 : index
    %37 = vector.load %arg4[%c0_21, %c0_22] : memref<1x128xf32, #tpu.memory_space<vmem>>, vector<1x128xf32>
    %38 = vector.shape_cast %37 : vector<1x128xf32> to vector<128xf32>
    %39 = vector.shape_cast %38 : vector<128xf32> to vector<1x128xf32>
    %40 = vector.broadcast %39 : vector<1x128xf32> to vector<256x128xf32>
    %41 = arith.addf %36, %40 : vector<256x128xf32>
    %42 = arith.truncf %41 : vector<256x128xf32> to vector<256x128xbf16>
    %c0_23 = arith.constant 0 : index
    %c0_24 = arith.constant 0 : index
    %c0_25 = arith.constant 0 : index
    %43 = vector.load %arg5[%c0_23, %c0_24, %c0_25] : memref<1x256x128xbf16, #tpu.memory_space<vmem>>, vector<1x256x128xbf16>
    %44 = vector.shape_cast %43 : vector<1x256x128xbf16> to vector<256x128xbf16>
    %45 = vector.shape_cast %42 : vector<256x128xbf16> to vector<1x256x128xbf16>
    tpu.vector_store %arg5[%c0_23, %c0_24, %c0_25], %45 {strides = array<i32>} : memref<1x256x128xbf16, #tpu.memory_space<vmem>>, vector<1x256x128xbf16>,
    return
  }
  func.func @transform_0(%arg0: i32, %arg1: i32) -> (i32, i32, i32) {
    %c0_i32 = arith.constant 0 : i32
    %c0_i32_0 = arith.constant 0 : i32
    %c0_i32_1 = arith.constant 0 : i32
    return %arg0, %c0_i32, %c0_i32_0 : i32, i32, i32
  }
  func.func @transform_1(%arg0: i32, %arg1: i32) -> (i32, i32) {
    %c0_i32 = arith.constant 0 : i32
    %c0_i32_0 = arith.constant 0 : i32
    %c0_i32_1 = arith.constant 0 : i32
    return %c0_i32, %c0_i32_0 : i32, i32
  }
  func.func @transform_2(%arg0: i32, %arg1: i32) -> (i32, i32) {
    %c0_i32 = arith.constant 0 : i32
    %c0_i32_0 = arith.constant 0 : i32
    %c0_i32_1 = arith.constant 0 : i32
    return %c0_i32, %c0_i32_0 : i32, i32
  }
  func.func @transform_3(%arg0: i32, %arg1: i32) -> (i32, i32, i32) {
    %c0_i32 = arith.constant 0 : i32
    %c0_i32_0 = arith.constant 0 : i32
    return %arg0, %arg1, %c0_i32 : i32, i32, i32
  }
}

</mosaic_0001>

<bundles_post_ra>
// kernel: tpu_custom_call.1
= control target key start
LH: loop header
LB: loop body
LE: loop exit
PB: predicated region body
PF: predicated region fallthrough
CT: control target
= control target key end

     0   :  { %8 = vsyncpa [#allocation5], 0  ;;  %s3183_s0 = inlined_call_operand.vmem [shape: bf16[2,256,4], index: 0, kind: input, shape index: {}]   ;;  %s3184_s1 = inlined_call_operand.hbm [shape: bf16[640,128], index: 1, kind: input, shape index: {}]   ;;  %s3185_s2 = inlined_call_operand.vmem [shape: f32[1,128], index: 2, kind: input, shape index: {}]   ;;  %s3186_s3 = inlined_call_operand.hbm [shape: bf16[2,256,128], index: 3, kind: output, shape index: {}]  }
   0x1   :  { %9 = vsyncpa [#allocation6], 0 }
   0x2   :  { %11 = vsyncpa [#allocation6 + $0x1], 0  ;;  %s2660_s12 = smov 0   ;;  %s2662_s13 = smov 0  }
   0x3   :  { %s2664_s14 = smov 0   ;;  %s2666_s15 = smov 0  }
   0x4   :  { %s2668_s16 = smov 0   ;;  %s2670_s17 = smov 0  }
   0x5 LB: > { %s1785_s18 = sadd.s32 4294967295, %s2631_s17   ;;  %s1786_s19 = sadd.s32 4294967294, %s2631_s17   ;;  %s2631_s17 = sphi %s2670_s17, %s17_s17   ;;  %s2627_s16 = sphi %s2668_s16, %s3204_s16   ;;  %s2623_s15 = sphi %s2666_s15, %s3203_s15   ;;  %s2619_s14 = sphi %s2664_s14, %s3202_s14   ;;  %s2615_s13 = sphi %s2662_s13, %s3201_s13   ;;  %s2611_s12 = sphi %s2660_s12, %s3200_s12  }
   0x6   : > { %s29_s20 = sadd.s32 1, %s2627_s16  ;;  %s106_s21 = sadd.s32 1, %s2619_s14 }
   0x7   : > { %p31_p0 = scmp.ge.s32.totalorder %s29_s20, 2  ;;  %p116_p1 = scmp.ne.s32.totalorder %s2619_s14, %s2615_s13 }
   0x8   : > { %p117_p2 = scmp.eq.s32.totalorder %s1785_s18, 1  ;;  %p122_p3 = scmp.ne.s32.totalorder %s2615_s13, %s2611_s12 }
   0x9   : > { %s3206_s20 = smov (%p31_p0, %s29_s20), 0  ;;  %p123_p5 = scmp.eq.s32.totalorder %s1786_s19, 1 }
   0xa   : > { %p2700_p4 = por %p117_p2, %p116_p1  ;;  %s101_s23 = ssub.s32 %s2627_s16, %s3206_s20 }
   0xb   : > { %p1787_p6 = scmp.ge.s32.totalorder %s2631_s17, 1  ;;  %p104_p7 = scmp.eq.s32.totalorder %s101_s23, 0 }
   0xc   : > { %s3191_s22 = scalar_select %p2700_p4, 1, 0 }
   0xd   : > { %p2707_p8 = por %p123_p5, %p122_p3  ;;  %p130_p9 = scmp.lt.s32.totalorder %s2631_s17, 3 }
   0xe   : > { %s2713_s25 = scalar_select %p104_p7, %s2619_s14, %s106_s21  }
   0xf   : > { %s3192_s24 = scalar_select %p2707_p8, 1, 0 }
  0x10   : > { %p2715_p10 = pnand %p1787_p6, %p130_p9  ;;  %p2719_p11 = scmp.eq.s32.totalorder %s1785_s18, 0 }
  0x11   : > { %s2633_s28 = smov [#allocation4]   ;;  %s2521_s6 = scalar_lea.hbm %s3184_s1, 5120 }
  0x12   : > { %s3193_s26 = scalar_select %p2715_p10, 1, 0 }
  0x13   : > { %s3194_s27 = scalar_select %p2719_p11, 1, 0 }
  0x14   : > { %p2400_p12 = pneg %p2715_p10  ;;  %s142_s29 = sshll.u32 %s2633_s28, 4  ;;  %s143_s29 = int_to_ptr.vmem [resolvable:$true] %s142_s29 }
  0x15   : > { %p2522_p0 = scmp.ne.s32.totalorder %s3184_s1, %s2521_s6  ;;  %p2528_p5 = scmp.lt.u32.totalorder %s2521_s6, %s3184_s1 }
  0x16   : > { %p2727_p13 = pnand %p2719_p11, %p2400_p12 }
  0x18   : > { %p2523_p1 = pneg %p2727_p13 }
  0x1a   : > { %p2524_p2 = pnand %p2523_p1, %p2522_p0 }
  0x1c   : > { %p2525_p3 = pneg %p2524_p2 }
  0x1e   : > { %p2530_p6 = pnand %p2528_p5, %p2525_p3 }
  0x20   : > { %2533 = shalt.err (!%p2530_p6)
}
  0x21   : > { %s2534_s11 = scalar_lea.vmem %s143_s29, 5120  ;;  %p2542_p8 = scmp.lt.s32.totalorder %s143_s29, %s143_s29 }
  0x22   : > { %p2535_p7 = scmp.ne.s32.totalorder %s143_s29, %s2534_s11  ;;  %p2543_p4 = scmp.lt.s32.totalorder %s2534_s11, %s2534_s11 }
  0x24   : > { %p2537_p9 = pnand %p2535_p7, %p2523_p1  ;;  %p2544_p11 = por %p2543_p4, %p2542_p8 }
  0x26   : > { %p2538_p12 = pneg %p2537_p9 }
  0x28   : > { %p2545_p10 = pnand %p2544_p11, %p2538_p12 }
  0x2a   : > { %2548 = shalt.err (!%p2545_p10)
}
  0x2b   : > { %s2634_s18 = smov 64   ;;  %s2635_s19 = smov 4  }
  0x2c   : > { %2403 = dma.hbm_to_vmem [thread:$0]  (!%p2727_p13), %s3184_s1, 5120, %s143_s29, [#allocation5], %s2634_s18, %s2634_s18, %s2635_s19  }
  0x2d   : > { %p3196_p0 = scmp.ne.s32.totalorder %s3193_s26, 0 }
  0x2e   : > { %p3197_p2 = scmp.ne.s32.totalorder (!%p3196_p0), %s3194_s27, 0 }
  0x2f   : > { %169 = sbr.rel (%p3196_p0) target bundleno = 507 (0x1fb), region = 32 }
  0x36   : > { %2602 = dma.done.wait (%p3197_p2), [#allocation5], 5120  }
  0x37   : > { %2604 = vsyncadd (%p3197_p2), [#allocation5], 4294962176  ;;  %vm204_vm0 = vcmask 31744   ;;  %v2636_v0 = vmov 0   ;;  %v2465_v1 = vld [vmem:[#allocation4 + $0x40] sm:$0xff]   ;;  %v2467_v3 = vld [vmem:[#allocation4 + $0x48] sm:$0xff]  }
  0x38   : > { %206 = vst.msk [vmem:[#allocation2 + $0x8] sm:$0xff] %vm204_vm0, %v2636_v0  ;;  %354 = vst [vmem:[#allocation3 + $0x8] sm:$0xff] %v2636_v0  ;;  %v2466_v2 = vld [vmem:[#allocation4] sm:$0xff]   ;;  %2082 = vmatprep.subr.bf16.mxu0 %v2465_v1  ;;  %2378 = vmatprep.subr.bf16.mxu1 %v2465_v1  ;;  %v2468_v4 = vld [vmem:[#allocation4 + $0x8] sm:$0xff]   ;;  %p193_p4 = scmp.lt.s32.totalorder %s2623_s15, 1  ;;  %s190_s6 = sand.u32 1, %s2615_s13  }
  0x39   : > { %205 = vst.msk [vmem:[#allocation2] sm:$0xff] %vm204_vm0, %v2636_v0  ;;  %207 = vst.msk [vmem:[#allocation2 + $0x90] sm:$0xff] %vm204_vm0, %v2636_v0  ;;  %2083 = vmatpush3.bf16.msra.mxu0 %v2466_v2  ;;  %2386 = vmatpush3.bf16.msra.mxu1 %v2466_v2  ;;  %v2469_v5 = vld [vmem:[#allocation4 + $0x50] sm:$0xff]   ;;  %v2471_v7 = vld [vmem:[#allocation4 + $0x58] sm:$0xff]   ;;  %s1792_s7 = sshll.u32 %s190_s6, 7  ;;  %s1986_s9 = sshll.u32 %s2623_s15, 11 }
  0x3a   : > { %208 = vst.msk [vmem:[#allocation2 + $0x98] sm:$0xff] %vm204_vm0, %v2636_v0  ;;  %353 = vst [vmem:[#allocation3] sm:$0xff] %v2636_v0  ;;  %2084 = vmatprep.subr.bf16.mxu0 %v2467_v3  ;;  %2379 = vmatprep.subr.bf16.mxu1 %v2467_v3  ;;  %v2470_v6 = vld [vmem:[#allocation4 + $0x10] sm:$0xff]   ;;  %s194_s26 = scalar_select %p193_p4, %s2623_s15, 1  ;;  %v2472_v8 = vld [vmem:[#allocation4 + $0x18] sm:$0xff]  }
  0x3b   : > { %355 = vst [vmem:[#allocation3 + $0x10] sm:$0xff] %v2636_v0  ;;  %356 = vst [vmem:[#allocation3 + $0x18] sm:$0xff] %v2636_v0  ;;  %v2473_v9 = vld [vmem:[#allocation4 + $0x60] sm:$0xff]   ;;  %v2475_v11 = vld [vmem:[#allocation4 + $0x68] sm:$0xff]   ;;  %s3066_s8 = scalar_lea.vmem [#allocation7], %s1792_s7  ;;  %s3130_s19 = scalar_lea.hbm %s3186_s3, %s1986_s9 }
  0x3c   : > { %357 = vst [vmem:[#allocation3 + $0x20] sm:$0xff] %v2636_v0  ;;  %358 = vst [vmem:[#allocation3 + $0x28] sm:$0xff] %v2636_v0  ;;  %s1953_s27 = sshll.u32 %s194_s26, 7  ;;  %v2474_v10 = vld [vmem:[#allocation4 + $0x20] sm:$0xff]   ;;  %v2476_v16 = vld [vmem:[#allocation4 + $0x28] sm:$0xff]   ;;  %s1690_s10 = sshll.u32 %s3066_s8, 4  ;;  %s3132_s10 = int_to_ptr.vmem [resolvable:$true] %s1690_s10 }
  0x3d   : > { %359 = vst [vmem:[#allocation3 + $0x30] sm:$0xff] %v2636_v0  ;;  %360 = vst [vmem:[#allocation3 + $0x38] sm:$0xff] %v2636_v0  ;;  %2085 = vmatpush3.bf16.msra.mxu0 %v2468_v4  ;;  %2387 = vmatpush3.bf16.msra.mxu1 %v2468_v4  ;;  %s2846_s30 = scalar_lea.vmem %s3183_s0, %s1953_s27  ;;  %v2477_v17 = vld [vmem:[#allocation4 + $0x70] sm:$0xff]   ;;  %v2479_v19 = vld [vmem:[#allocation4 + $0x78] sm:$0xff]   ;;  %s3137_s21 = scalar_lea.sflag [#allocation6], %s190_s6 }
  0x3e   : > { %361 = vst [vmem:[#allocation3 + $0x40] sm:$0xff] %v2636_v0  ;;  %362 = vst [vmem:[#allocation3 + $0x48] sm:$0xff] %v2636_v0  ;;  %2086 = vmatprep.subr.bf16.mxu0 %v2469_v5  ;;  %2380 = vmatprep.subr.bf16.mxu1 %v2469_v5  ;;  %v2481_v13 = vld [vmem:[%s2846_s30 + $0x58] sm:$0xff]   ;;  %v2482_v15 = vld [vmem:[%s2846_s30 + $0x50] sm:$0xff]   ;;  %s2549_s23 = scalar_lea.vmem %s3132_s10, 2048  ;;  %p3198_p10 = scmp.ne.s32.totalorder %s3191_s22, 0 }
  0x3f   : > { %363 = vst [vmem:[#allocation3 + $0x50] sm:$0xff] %v2636_v0  ;;  %364 = vst [vmem:[#allocation3 + $0x58] sm:$0xff] %v2636_v0  ;;  %v1811_v12 = vld [vmem:[#allocation2 + $0x8] sm:$0xff]  ;;  %v2478_v18 = vld [vmem:[#allocation4 + $0x30] sm:$0xff]   ;;  %p2550_p8 = scmp.ne.s32.totalorder %s3132_s10, %s2549_s23  ;;  %s2637_s15 = smov [#allocation7]  }
  0x40   : > { %365 = vst [vmem:[#allocation3 + $0x60] sm:$0xff] %v2636_v0  ;;  %366 = vst [vmem:[#allocation3 + $0x68] sm:$0xff] %v2636_v0  ;;  %v439_v14 = vld [vmem:[#allocation2] sm:$0xff]  ;;  %v2480_v22 = vld [vmem:[#allocation4 + $0x38] sm:$0xff]   ;;  %s2553_s26 = sshll.u32 %s2637_s15, 4  ;;  %s2554_s26 = int_to_ptr.vmem [resolvable:$false] %s2553_s26 }
  0x41   : > { %367 = vst [vmem:[#allocation3 + $0x70] sm:$0xff] %v2636_v0  ;;  %368 = vst [vmem:[#allocation3 + $0x78] sm:$0xff] %v2636_v0  ;;  %2087 = vmatpush3.bf16.msra.mxu0 %v2470_v6  ;;  %2388 = vmatpush3.bf16.msra.mxu1 %v2470_v6  ;;  %v2488_v21 = vld [vmem:[%s2846_s30] sm:$0xff]   ;;  %v2494_v30 = vld [vmem:[%s2846_s30 + $0x8] sm:$0xff]   ;;  %p2551_p11 = pnand %p2550_p8, %p3198_p10  ;;  %s2555_s27 = scalar_lea.vmem %s2554_s26, 4096 }
  0x42   : > { %369 = vst [vmem:[#allocation3 + $0x80] sm:$0xff] %v2636_v0  ;;  %370 = vst [vmem:[#allocation3 + $0x88] sm:$0xff] %v2636_v0  ;;  %2088 = vmatprep.subr.bf16.mxu0 %v2471_v7  ;;  %2381 = vmatprep.subr.bf16.mxu1 %v2471_v7  ;;  %v2483_v24 = vld [vmem:[#allocation4 + $0xc0] sm:$0xff]   ;;  %v2495_v32 = vld [vmem:[%s2846_s30 + $0x68] sm:$0xff]   ;;  %p2556_p1 = scmp.lt.s32.totalorder %s3132_s10, %s2554_s26  ;;  %p2557_p3 = scmp.lt.s32.totalorder %s2555_s27, %s2549_s23 }
  0x43   : > { %371 = vst [vmem:[#allocation3 + $0x90] sm:$0xff] %v2636_v0  ;;  %372 = vst [vmem:[#allocation3 + $0x98] sm:$0xff] %v2636_v0  ;;  %v2489_v25 = vld [vmem:[%s2846_s30 + $0x60] sm:$0xff]   ;;  %v2485_v34 = vld [vmem:[#allocation4 + $0xc8] sm:$0xff]   ;;  %p2552_p13 = pneg %p2551_p11 }
  0x44   : > { %373 = vst [vmem:[#allocation3 + $0xa0] sm:$0xff] %v2636_v0  ;;  %374 = vst [vmem:[#allocation3 + $0xa8] sm:$0xff] %v2636_v0  ;;  %v2486_v27 = vld [vmem:[#allocation4 + $0x100] sm:$0xff]   ;;  %v2497_v37 = vld [vmem:[#allocation4 + $0x108] sm:$0xff]   ;;  %p2558_p5 = por %p2557_p3, %p2556_p1 }
  0x45   : > { %375 = vst [vmem:[#allocation3 + $0xb0] sm:$0xff] %v2636_v0  ;;  %376 = vst [vmem:[#allocation3 + $0xb8] sm:$0xff] %v2636_v0  ;;  %2089 = vmatpush3.bf16.msra.mxu0 %v2472_v8  ;;  %2389 = vmatpush3.bf16.msra.mxu1 %v2472_v8  ;;  %v2484_v29 = vld [vmem:[#allocation4 + $0x80] sm:$0xff]   ;;  %v2487_v38 = vld [vmem:[#allocation4 + $0x88] sm:$0xff]  }
  0x46   : > { %377 = vst [vmem:[#allocation3 + $0xc0] sm:$0xff] %v2636_v0  ;;  %378 = vst [vmem:[#allocation3 + $0xc8] sm:$0xff] %v2636_v0  ;;  %2090 = vmatprep.subr.bf16.mxu0 %v2473_v9  ;;  %2382 = vmatprep.subr.bf16.mxu1 %v2473_v9  ;;  %v2490_v39 = vld [vmem:[#allocation4 + $0xd0] sm:$0xff]   ;;  %v2492_v48 = vld [vmem:[#allocation4 + $0xd8] sm:$0xff]   ;;  %p2559_p6 = pnand %p2558_p5, %p2552_p13 }
  0x47   : > { %379 = vst [vmem:[#allocation3 + $0xd0] sm:$0xff] %v2636_v0  ;;  %380 = vst [vmem:[#allocation3 + $0xd8] sm:$0xff] %v2636_v0  ;;  %v2491_v41 = vld [vmem:[#allocation4 + $0x90] sm:$0xff]   ;;  %v2493_v50 = vld [vmem:[#allocation4 + $0x98] sm:$0xff]  }
  0x48   : > { %381 = vst [vmem:[#allocation3 + $0xe0] sm:$0xff] %v2636_v0  ;;  %382 = vst [vmem:[#allocation3 + $0xe8] sm:$0xff] %v2636_v0  ;;  %v2501_v42 = vld [vmem:[%s2846_s30 + $0x10] sm:$0xff]   ;;  %v2496_v51 = vld [vmem:[#allocation4 + $0xe0] sm:$0xff]  }
  0x49   : > { %383 = vst [vmem:[#allocation3 + $0xf0] sm:$0xff] %v2636_v0  ;;  %384 = vst [vmem:[#allocation3 + $0xf8] sm:$0xff] %v2636_v0  ;;  %2091 = vmatpush3.bf16.msra.mxu0 %v2474_v10  ;;  %2390 = vmatpush3.bf16.msra.mxu1 %v2474_v10  ;;  %v2502_v49 = vld [vmem:[%s2846_s30 + $0x70] sm:$0xff]   ;;  %v2498_v55 = vld [vmem:[#allocation4 + $0xa0] sm:$0xff]  }
  0x4a   : > { %385 = vst [vmem:[#allocation3 + $0x100] sm:$0xff] %v2636_v0  ;;  %386 = vst [vmem:[#allocation3 + $0x108] sm:$0xff] %v2636_v0  ;;  %2092 = vmatprep.subr.bf16.mxu0 %v2475_v11  ;;  %2383 = vmatprep.subr.bf16.mxu1 %v2475_v11  ;;  %v2506_v52 = vld [vmem:[#allocation4 + $0x110] sm:$0xff]   ;;  %v2499_v59 = vld [vmem:[#allocation4 + $0xe8] sm:$0xff]  }
  0x4b   : > { %387 = vst [vmem:[#allocation3 + $0x110] sm:$0xff] %v2636_v0  ;;  %388 = vst [vmem:[#allocation3 + $0x118] sm:$0xff] %v2636_v0  ;;  %v2508_v60 = vld [vmem:[%s2846_s30 + $0x18] sm:$0xff]   ;;  %v2500_v61 = vld [vmem:[#allocation4 + $0xa8] sm:$0xff]  }
  0x4c   : > { %389 = vst [vmem:[#allocation3 + $0x120] sm:$0xff] %v2636_v0  ;;  %390 = vst [vmem:[#allocation3 + $0x128] sm:$0xff] %v2636_v0  ;;  %v2503_v63 = vld [vmem:[#allocation4 + $0xf0] sm:$0xff]   ;;  %v2510_v2 = vld [vmem:[#allocation4 + $0x118] sm:$0xff]  }
  0x4d   : > { %391 = vst [vmem:[#allocation3 + $0x130] sm:$0xff] %v2636_v0  ;;  %392 = vst [vmem:[#allocation3 + $0x138] sm:$0xff] %v2636_v0  ;;  %2093 = vmatpush3.bf16.msra.mxu0 %v2476_v16  ;;  %2391 = vmatpush3.bf16.msra.mxu1 %v2476_v16  ;;  %v2511_v3 = vld [vmem:[%s2846_s30 + $0x28] sm:$0xff]   ;;  %v2512_v4 = vld [vmem:[#allocation4 + $0x120] sm:$0xff]  }
  0x4e   : > { %393 = vst [vmem:[#allocation3 + $0x140] sm:$0xff] %v2636_v0  ;;  %394 = vst [vmem:[#allocation3 + $0x148] sm:$0xff] %v2636_v0  ;;  %2094 = vmatprep.subr.bf16.mxu0 %v2477_v17  ;;  %2384 = vmatprep.subr.bf16.mxu1 %v2477_v17  ;;  %v2504_v7 = vld [vmem:[#allocation4 + $0xb0] sm:$0xff]   ;;  %v2505_v8 = vld [vmem:[#allocation4 + $0xf8] sm:$0xff]  }
  0x4f   : > { %395 = vst [vmem:[#allocation3 + $0x150] sm:$0xff] %v2636_v0  ;;  %396 = vst [vmem:[#allocation3 + $0x158] sm:$0xff] %v2636_v0  ;;  %v2513_v10 = vld [vmem:[%s2846_s30 + $0x30] sm:$0xff]   ;;  %v2516_v17 = vld [vmem:[%s2846_s30 + $0x40] sm:$0xff]  }
  0x50   : > { %397 = vst [vmem:[#allocation3 + $0x160] sm:$0xff] %v2636_v0  ;;  %398 = vst [vmem:[#allocation3 + $0x168] sm:$0xff] %v2636_v0 }
  0x51   : > { %399 = vst [vmem:[#allocation3 + $0x170] sm:$0xff] %v2636_v0  ;;  %400 = vst [vmem:[#allocation3 + $0x178] sm:$0xff] %v2636_v0  ;;  %2095 = vmatpush3.bf16.msra.mxu0 %v2478_v18  ;;  %2392 = vmatpush3.bf16.msra.mxu1 %v2478_v18 }
  0x52   : > { %401 = vst [vmem:[#allocation3 + $0x180] sm:$0xff] %v2636_v0  ;;  %402 = vst [vmem:[#allocation3 + $0x188] sm:$0xff] %v2636_v0  ;;  %2096 = vmatprep.subr.bf16.mxu0 %v2479_v19  ;;  %2385 = vmatprep.subr.bf16.mxu1 %v2479_v19  ;;  %v2517_v19 = vld [vmem:[#allocation4 + $0x130] sm:$0xff]  }
  0x53   : > { %403 = vst [vmem:[#allocation3 + $0x190] sm:$0xff] %v2636_v0  ;;  %404 = vst [vmem:[#allocation3 + $0x198] sm:$0xff] %v2636_v0 }
  0x54   : > { %405 = vst [vmem:[#allocation3 + $0x1a0] sm:$0xff] %v2636_v0  ;;  %406 = vst [vmem:[#allocation3 + $0x1a8] sm:$0xff] %v2636_v0 }
  0x55   : > { %407 = vst [vmem:[#allocation3 + $0x1b0] sm:$0xff] %v2636_v0  ;;  %408 = vst [vmem:[#allocation3 + $0x1b8] sm:$0xff] %v2636_v0  ;;  %2097 = vmatpush3.bf16.msra.mxu0 %v2480_v22  ;;  %2393 = vmatpush3.bf16.msra.mxu1 %v2480_v22 }
  0x56   : > { %409 = vst [vmem:[#allocation3 + $0x1c0] sm:$0xff] %v2636_v0  ;;  %410 = vst [vmem:[#allocation3 + $0x1c8] sm:$0xff] %v2636_v0  ;;  %2194 = vmatprep.subr.bf16.mxu1 %v2483_v24  ;;  %2330 = vmatprep.subr.bf16.mxu0 %v2486_v27 }
  0x57   : > { %411 = vst [vmem:[#allocation3 + $0x1d0] sm:$0xff] %v2636_v0  ;;  %412 = vst [vmem:[#allocation3 + $0x1d8] sm:$0xff] %v2636_v0 }
  0x58   : > { %413 = vst [vmem:[#allocation3 + $0x1e0] sm:$0xff] %v2636_v0  ;;  %414 = vst [vmem:[#allocation3 + $0x1e8] sm:$0xff] %v2636_v0 }
  0x59   : > { %415 = vst [vmem:[#allocation3 + $0x1f0] sm:$0xff] %v2636_v0  ;;  %416 = vst [vmem:[#allocation3 + $0x1f8] sm:$0xff] %v2636_v0 }
  0x5a   : > { %417 = vst [vmem:[#allocation3 + $0x200] sm:$0xff] %v2636_v0  ;;  %418 = vst [vmem:[#allocation3 + $0x208] sm:$0xff] %v2636_v0 }
  0x5b   : > { %419 = vst [vmem:[#allocation3 + $0x210] sm:$0xff] %v2636_v0  ;;  %420 = vst [vmem:[#allocation3 + $0x218] sm:$0xff] %v2636_v0 }
  0x5c   : > { %421 = vst [vmem:[#allocation3 + $0x220] sm:$0xff] %v2636_v0  ;;  %422 = vst [vmem:[#allocation3 + $0x228] sm:$0xff] %v2636_v0 }
  0x5d   : > { %423 = vst [vmem:[#allocation3 + $0x230] sm:$0xff] %v2636_v0  ;;  %424 = vst [vmem:[#allocation3 + $0x238] sm:$0xff] %v2636_v0 }
  0x5e   : > { %425 = vst [vmem:[#allocation3 + $0x240] sm:$0xff] %v2636_v0  ;;  %426 = vst [vmem:[#allocation3 + $0x248] sm:$0xff] %v2636_v0 }
  0x5f   : > { %427 = vst [vmem:[#allocation3 + $0x250] sm:$0xff] %v2636_v0  ;;  %428 = vst [vmem:[#allocation3 + $0x258] sm:$0xff] %v2636_v0 }
  0x60   : > { %429 = vst [vmem:[#allocation3 + $0x260] sm:$0xff] %v2636_v0  ;;  %430 = vst [vmem:[#allocation3 + $0x268] sm:$0xff] %v2636_v0 }
  0x61   : > { %431 = vst [vmem:[#allocation3 + $0x270] sm:$0xff] %v2636_v0  ;;  %432 = vst [vmem:[#allocation3 + $0x278] sm:$0xff] %v2636_v0  ;;  %v2509_v0 = vld [vmem:[%s2846_s30 + $0x20] sm:$0xff]  }
  0x62   : > { %494 = vst.msk [vmem:[#allocation3 + $0x8] sm:$0xff] %vm204_vm0, %v1811_v12  ;;  %457 = vst.msk [vmem:[#allocation3 + $0x28] sm:$0xff] %vm204_vm0, %v1811_v12 }
  0x63   : > { %456 = vst.msk [vmem:[#allocation3] sm:$0xff] %vm204_vm0, %v439_v14  ;;  %348 = vst.msk [vmem:[#allocation2 + $0x68] sm:$0xff] %vm204_vm0, %v2481_v13  ;;  %v2514_v13 = vld [vmem:[%s2846_s30 + $0x38] sm:$0xff]  }
  0x64   : > { %347 = vst.msk [vmem:[#allocation2 + $0x60] sm:$0xff] %vm204_vm0, %v2482_v15  ;;  %337 = vst.msk [vmem:[#allocation2 + $0x10] sm:$0xff] %vm204_vm0, %v2488_v21  ;;  %v2507_v14 = vld [vmem:[#allocation4 + $0xb8] sm:$0xff]   ;;  %v2515_v15 = vld [vmem:[#allocation4 + $0x128] sm:$0xff]  }
  0x65   : > { %349 = vst.msk [vmem:[#allocation2 + $0x70] sm:$0xff] %vm204_vm0, %v2489_v25  ;;  %338 = vst.msk [vmem:[#allocation2 + $0x18] sm:$0xff] %vm204_vm0, %v2494_v30  ;;  %v2519_v25 = vld [vmem:[#allocation4 + $0x138] sm:$0xff]  }
  0x66   : > { %350 = vst.msk [vmem:[#allocation2 + $0x78] sm:$0xff] %vm204_vm0, %v2495_v32  ;;  %339 = vst.msk [vmem:[#allocation2 + $0x20] sm:$0xff] %vm204_vm0, %v2501_v42 }
  0x67   : > { %351 = vst.msk [vmem:[#allocation2 + $0x80] sm:$0xff] %vm204_vm0, %v2502_v49  ;;  %340 = vst.msk [vmem:[#allocation2 + $0x28] sm:$0xff] %vm204_vm0, %v2508_v60 }
  0x68   : > { %341 = vst.msk [vmem:[#allocation2 + $0x30] sm:$0xff] %vm204_vm0, %v2509_v0  ;;  %342 = vst.msk [vmem:[#allocation2 + $0x38] sm:$0xff] %vm204_vm0, %v2511_v3 }
  0x69   : > { %v625_v20 = vld [vmem:[#allocation3 + $0x8] sm:$0xff]  ;;  %343 = vst.msk [vmem:[#allocation2 + $0x40] sm:$0xff] %vm204_vm0, %v2513_v10  ;;  %344 = vst.msk [vmem:[#allocation2 + $0x48] sm:$0xff] %vm204_vm0, %v2514_v13 }
  0x6a   : > { %1063 = vmatprep.mubr.bf16.mxu0 %v625_v20  ;;  %v1823_v23 = vld [vmem:[#allocation2 + $0x68] sm:$0xff]  ;;  %v624_v28 = vld [vmem:[#allocation3] sm:$0xff]  ;;  %345 = vst.msk [vmem:[#allocation2 + $0x50] sm:$0xff] %vm204_vm0, %v2516_v17 }
  0x6b   : > { %506 = vst.msk [vmem:[#allocation3 + $0x1e8] sm:$0xff] %vm204_vm0, %v1823_v23  ;;  %v451_v26 = vld [vmem:[#allocation2 + $0x60] sm:$0xff]  ;;  %469 = vst.msk [vmem:[#allocation3 + $0x208] sm:$0xff] %vm204_vm0, %v1823_v23  ;;  %v1812_v31 = vld [vmem:[#allocation2 + $0x10] sm:$0xff]  ;;  %1064 = vmatmul.mubr.bf16.vlgmr.msra.gmra.mrb[0].mxu0 %v624_v28 }
  0x6c   : > { %580 = vst.msk [vmem:[#allocation3 + $0x1a8] sm:$0xff] %vm204_vm0, %v1823_v23  ;;  %543 = vst.msk [vmem:[#allocation3 + $0x1c8] sm:$0xff] %vm204_vm0, %v1823_v23  ;;  %2331 = vmatpush3.bf16.msra.mxu0 %v2486_v27  ;;  %v1824_v36 = vld [vmem:[#allocation2 + $0x70] sm:$0xff]  ;;  %v629_v40 = vld [vmem:[#allocation3 + $0x28] sm:$0xff] }
  0x6d   : > { %617 = vst.msk [vmem:[#allocation3 + $0x188] sm:$0xff] %vm204_vm0, %v1823_v23  ;;  %468 = vst.msk [vmem:[#allocation3 + $0x1e0] sm:$0xff] %vm204_vm0, %v451_v26  ;;  %2332 = vmatprep.subr.bf16.mxu0 %v2497_v37  ;;  %v1813_v45 = vld [vmem:[#allocation2 + $0x18] sm:$0xff]  ;;  %v1814_v56 = vld [vmem:[#allocation2 + $0x20] sm:$0xff] }
  0x6e   : > { %505 = vst.msk [vmem:[#allocation3 + $0x1c0] sm:$0xff] %vm204_vm0, %v451_v26  ;;  %579 = vst.msk [vmem:[#allocation3 + $0x180] sm:$0xff] %vm204_vm0, %v451_v26  ;;  %v1825_v46 = vld [vmem:[#allocation2 + $0x78] sm:$0xff]  ;;  %v1826_v62 = vld [vmem:[#allocation2 + $0x80] sm:$0xff] }
  0x6f   : > { %542 = vst.msk [vmem:[#allocation3 + $0x1a0] sm:$0xff] %vm204_vm0, %v451_v26  ;;  %616 = vst.msk [vmem:[#allocation3 + $0x160] sm:$0xff] %vm204_vm0, %v451_v26  ;;  %v1815_v12 = vld [vmem:[#allocation2 + $0x28] sm:$0xff]  ;;  %v1816_v16 = vld [vmem:[#allocation2 + $0x30] sm:$0xff] }
  0x70   : > { %495 = vst.msk [vmem:[#allocation3 + $0x30] sm:$0xff] %vm204_vm0, %v1812_v31  ;;  %458 = vst.msk [vmem:[#allocation3 + $0x50] sm:$0xff] %vm204_vm0, %v1812_v31  ;;  %2333 = vmatpush3.bf16.msra.mxu0 %v2497_v37  ;;  %v1817_v18 = vld [vmem:[#allocation2 + $0x38] sm:$0xff]  ;;  %v2518_v20 = vld [vmem:[%s2846_s30 + $0x48] sm:$0xff]  }
  0x71   : > { %532 = vst.msk [vmem:[#allocation3 + $0x10] sm:$0xff] %vm204_vm0, %v1812_v31  ;;  %507 = vst.msk [vmem:[#allocation3 + $0x210] sm:$0xff] %vm204_vm0, %v1824_v36  ;;  %2334 = vmatprep.subr.bf16.mxu0 %v2506_v52  ;;  %v1818_v26 = vld [vmem:[#allocation2 + $0x40] sm:$0xff]  ;;  %v1819_v27 = vld [vmem:[#allocation2 + $0x48] sm:$0xff] }
  0x72   : > { %v685_v33 = vld [vmem:[#allocation3 + $0x1e8] sm:$0xff]  ;;  %470 = vst.msk [vmem:[#allocation3 + $0x230] sm:$0xff] %vm204_vm0, %v1824_v36  ;;  %581 = vst.msk [vmem:[#allocation3 + $0x1d0] sm:$0xff] %vm204_vm0, %v1824_v36 }
  0x73   : > { %1159 = vmatprep.mubr.bf16.mxu1 %v685_v33  ;;  %544 = vst.msk [vmem:[#allocation3 + $0x1f0] sm:$0xff] %vm204_vm0, %v1824_v36  ;;  %618 = vst.msk [vmem:[#allocation3 + $0x1b0] sm:$0xff] %vm204_vm0, %v1824_v36  ;;  %v689_v44 = vld [vmem:[#allocation3 + $0x208] sm:$0xff] }
  0x74   : > { %v684_v35 = vld [vmem:[#allocation3 + $0x1e0] sm:$0xff]  ;;  %496 = vst.msk [vmem:[#allocation3 + $0x58] sm:$0xff] %vm204_vm0, %v1813_v45  ;;  %459 = vst.msk [vmem:[#allocation3 + $0x78] sm:$0xff] %vm204_vm0, %v1813_v45  ;;  %2335 = vmatpush3.bf16.msra.mxu0 %v2506_v52 }
  0x75   : > { %1160 = vmatmul.mubr.bf16.vlgmr.msra.gmra.mrb[0].mxu1 %v684_v35  ;;  %570 = vst.msk [vmem:[#allocation3 + $0x18] sm:$0xff] %vm204_vm0, %v1813_v45  ;;  %533 = vst.msk [vmem:[#allocation3 + $0x38] sm:$0xff] %vm204_vm0, %v1813_v45  ;;  %2336 = vmatprep.subr.bf16.mxu0 %v2510_v2 }
  0x76   : > { %2195 = vmatpush3.bf16.msra.mxu1 %v2484_v29  ;;  %508 = vst.msk [vmem:[#allocation3 + $0x238] sm:$0xff] %vm204_vm0, %v1825_v46  ;;  %471 = vst.msk [vmem:[#allocation3 + $0x258] sm:$0xff] %vm204_vm0, %v1825_v46  ;;  %v1820_v29 = vld [vmem:[#allocation2 + $0x50] sm:$0xff] }
  0x77   : > { %2196 = vmatprep.subr.bf16.mxu1 %v2485_v34  ;;  %v630_v43 = vld [vmem:[#allocation3 + $0x30] sm:$0xff]  ;;  %582 = vst.msk [vmem:[#allocation3 + $0x1f8] sm:$0xff] %vm204_vm0, %v1825_v46  ;;  %545 = vst.msk [vmem:[#allocation3 + $0x218] sm:$0xff] %vm204_vm0, %v1825_v46 }
  0x78   : > { %1071 = vmatprep.mubr.bf16.mxu0 %v630_v43  ;;  %v690_v47 = vld [vmem:[#allocation3 + $0x210] sm:$0xff]  ;;  %619 = vst.msk [vmem:[#allocation3 + $0x1d8] sm:$0xff] %vm204_vm0, %v1825_v46  ;;  %497 = vst.msk [vmem:[#allocation3 + $0x80] sm:$0xff] %vm204_vm0, %v1814_v56  ;;  %2337 = vmatpush3.bf16.msra.mxu0 %v2510_v2 }
  0x79   : > { %1072 = vmatmul.mubr.bf16.gmra.mrb[4].mxu0 %v629_v40  ;;  %1167 = vmatprep.mubr.bf16.mxu1 %v690_v47  ;;  %v634_v53 = vld [vmem:[#allocation3 + $0x50] sm:$0xff]  ;;  %460 = vst.msk [vmem:[#allocation3 + $0xa0] sm:$0xff] %vm204_vm0, %v1814_v56  ;;  %571 = vst.msk [vmem:[#allocation3 + $0x40] sm:$0xff] %vm204_vm0, %v1814_v56 }
  0x7a   : > { %2197 = vmatpush3.bf16.msra.mxu1 %v2487_v38  ;;  %v694_v58 = vld [vmem:[#allocation3 + $0x230] sm:$0xff]  ;;  %534 = vst.msk [vmem:[#allocation3 + $0x60] sm:$0xff] %vm204_vm0, %v1814_v56  ;;  %608 = vst.msk [vmem:[#allocation3 + $0x20] sm:$0xff] %vm204_vm0, %v1814_v56  ;;  %2338 = vmatprep.subr.bf16.mxu0 %v2512_v4 }
  0x7b   : > { %2198 = vmatprep.subr.bf16.mxu1 %v2490_v39  ;;  %v635_v54 = vld [vmem:[#allocation3 + $0x58] sm:$0xff]  ;;  %509 = vst.msk [vmem:[#allocation3 + $0x260] sm:$0xff] %vm204_vm0, %v1826_v62  ;;  %583 = vst.msk [vmem:[#allocation3 + $0x220] sm:$0xff] %vm204_vm0, %v1826_v62  ;;  %v626_v22 = vld [vmem:[#allocation3 + $0x10] sm:$0xff] }
  0x7c   : > { %1079 = vmatprep.mubr.bf16.mxu0 %v635_v54  ;;  %620 = vst.msk [vmem:[#allocation3 + $0x200] sm:$0xff] %vm204_vm0, %v1826_v62  ;;  %546 = vst.msk [vmem:[#allocation3 + $0x240] sm:$0xff] %vm204_vm0, %v1826_v62  ;;  %v639_v1 = vld [vmem:[#allocation3 + $0x78] sm:$0xff]  ;;  %2339 = vmatpush3.bf16.msra.mxu0 %v2512_v4  ;;  %v1858_v40 = vld [vmem:[#allocation2 + $0x90] sm:$0xff] }
  0x7d   : > { %1168 = vmatmul.mubr.bf16.gmra.mrb[4].mxu1 %v689_v44  ;;  %v695_v57 = vld [vmem:[#allocation3 + $0x238] sm:$0xff]  ;;  %498 = vst.msk [vmem:[#allocation3 + $0xa8] sm:$0xff] %vm204_vm0, %v1815_v12  ;;  %461 = vst.msk [vmem:[#allocation3 + $0xc8] sm:$0xff] %vm204_vm0, %v1815_v12  ;;  %2340 = vmatprep.subr.bf16.mxu0 %v2515_v15 }
  0x7e   : > { %2199 = vmatpush3.bf16.msra.mxu1 %v2491_v41  ;;  %1175 = vmatprep.mubr.bf16.mxu1 %v695_v57  ;;  %v699_v6 = vld [vmem:[#allocation3 + $0x258] sm:$0xff]  ;;  %572 = vst.msk [vmem:[#allocation3 + $0x68] sm:$0xff] %vm204_vm0, %v1815_v12  ;;  %535 = vst.msk [vmem:[#allocation3 + $0x88] sm:$0xff] %vm204_vm0, %v1815_v12  ;;  %v680_v57 = vld [vmem:[#allocation3 + $0x1c0] sm:$0xff] }
  0x7f   : > { %2200 = vmatprep.subr.bf16.mxu1 %v2492_v48  ;;  %v640_v5 = vld [vmem:[#allocation3 + $0x80] sm:$0xff]  ;;  %v627_v9 = vld [vmem:[#allocation3 + $0x18] sm:$0xff]  ;;  %609 = vst.msk [vmem:[#allocation3 + $0x48] sm:$0xff] %vm204_vm0, %v1815_v12  ;;  %499 = vst.msk [vmem:[#allocation3 + $0xd0] sm:$0xff] %vm204_vm0, %v1816_v16 }
  0x80   : > { %462 = vst.msk [vmem:[#allocation3 + $0xf0] sm:$0xff] %vm204_vm0, %v1816_v16  ;;  %573 = vst.msk [vmem:[#allocation3 + $0x90] sm:$0xff] %vm204_vm0, %v1816_v16  ;;  %2341 = vmatpush3.bf16.msra.mxu0 %v2515_v15  ;;  %v644_v21 = vld [vmem:[#allocation3 + $0xa0] sm:$0xff]  ;;  %v631_v32 = vld [vmem:[#allocation3 + $0x38] sm:$0xff] }
  0x81   : > { %1080 = vmatmul.mubr.bf16.gmra.mrb[8].mxu0 %v634_v53  ;;  %536 = vst.msk [vmem:[#allocation3 + $0xb0] sm:$0xff] %vm204_vm0, %v1816_v16  ;;  %610 = vst.msk [vmem:[#allocation3 + $0x70] sm:$0xff] %vm204_vm0, %v1816_v16  ;;  %2342 = vmatprep.subr.bf16.mxu0 %v2517_v19  ;;  %v632_v24 = vld [vmem:[#allocation3 + $0x40] sm:$0xff]  ;;  %v2520_v39 = vld [vmem:[%s2846_s30 + $0x78] sm:$0xff]  }
  0x82   : > { %2201 = vmatpush3.bf16.msra.mxu1 %v2493_v50  ;;  %1087 = vmatprep.mubr.bf16.mxu0 %v640_v5  ;;  %v700_v11 = vld [vmem:[#allocation3 + $0x260] sm:$0xff]  ;;  %500 = vst.msk [vmem:[#allocation3 + $0xf8] sm:$0xff] %vm204_vm0, %v1817_v18  ;;  %463 = vst.msk [vmem:[#allocation3 + $0x118] sm:$0xff] %vm204_vm0, %v1817_v18  ;;  %v1874_v41 = vld [vmem:[#allocation2 + $0x98] sm:$0xff] }
  0x83   : > { %2202 = vmatprep.subr.bf16.mxu1 %v2496_v51  ;;  %574 = vst.msk [vmem:[#allocation3 + $0xb8] sm:$0xff] %vm204_vm0, %v1817_v18  ;;  %537 = vst.msk [vmem:[#allocation3 + $0xd8] sm:$0xff] %vm204_vm0, %v1817_v18  ;;  %v636_v36 = vld [vmem:[#allocation3 + $0x60] sm:$0xff]  ;;  %v677_v5 = vld [vmem:[#allocation3 + $0x1a8] sm:$0xff] }
  0x84   : > { %611 = vst.msk [vmem:[#allocation3 + $0x98] sm:$0xff] %vm204_vm0, %v1817_v18  ;;  %346 = vst.msk [vmem:[#allocation2 + $0x58] sm:$0xff] %vm204_vm0, %v2518_v20  ;;  %v645_v23 = vld [vmem:[#allocation3 + $0xa8] sm:$0xff]  ;;  %2343 = vmatpush3.bf16.msra.mxu0 %v2517_v19  ;;  %v628_v62 = vld [vmem:[#allocation3 + $0x20] sm:$0xff] }
  0x85   : > { %1176 = vmatmul.mubr.bf16.gmra.mrb[8].mxu1 %v694_v58  ;;  %501 = vst.msk [vmem:[#allocation3 + $0x120] sm:$0xff] %vm204_vm0, %v1818_v26  ;;  %502 = vst.msk [vmem:[#allocation3 + $0x148] sm:$0xff] %vm204_vm0, %v1819_v27  ;;  %2344 = vmatprep.subr.bf16.mxu0 %v2519_v25  ;;  %v649_v31 = vld [vmem:[#allocation3 + $0xc8] sm:$0xff]  ;;  %v687_v13 = vld [vmem:[#allocation3 + $0x1f8] sm:$0xff] }
  0x86   : > { %2203 = vmatpush3.bf16.msra.mxu1 %v2498_v55  ;;  %1183 = vmatprep.mubr.bf16.mxu1 %v700_v11  ;;  %v650_v28 = vld [vmem:[#allocation3 + $0xd0] sm:$0xff]  ;;  %464 = vst.msk [vmem:[#allocation3 + $0x140] sm:$0xff] %vm204_vm0, %v1818_v26  ;;  %575 = vst.msk [vmem:[#allocation3 + $0xe0] sm:$0xff] %vm204_vm0, %v1818_v26  ;;  %v637_v34 = vld [vmem:[#allocation3 + $0x68] sm:$0xff] }
  0x87   : > { %2204 = vmatprep.subr.bf16.mxu1 %v2499_v59  ;;  %465 = vst.msk [vmem:[#allocation3 + $0x168] sm:$0xff] %vm204_vm0, %v1819_v27  ;;  %576 = vst.msk [vmem:[#allocation3 + $0x108] sm:$0xff] %vm204_vm0, %v1819_v27  ;;  %v654_v35 = vld [vmem:[#allocation3 + $0xf0] sm:$0xff]  ;;  %v641_v43 = vld [vmem:[#allocation3 + $0x88] sm:$0xff] }
  0x88   : > { %538 = vst.msk [vmem:[#allocation3 + $0x100] sm:$0xff] %vm204_vm0, %v1818_v26  ;;  %539 = vst.msk [vmem:[#allocation3 + $0x128] sm:$0xff] %vm204_vm0, %v1819_v27  ;;  %2345 = vmatpush3.bf16.msra.mxu0 %v2519_v25  ;;  %v642_v38 = vld [vmem:[#allocation3 + $0x90] sm:$0xff]  ;;  %v633_v0 = vld [vmem:[#allocation3 + $0x48] sm:$0xff] }
  0x89   : > { %1088 = vmatmul.mubr.bf16.gmra.mrb[12].mxu0 %v639_v1  ;;  %612 = vst.msk [vmem:[#allocation3 + $0xc0] sm:$0xff] %vm204_vm0, %v1818_v26  ;;  %613 = vst.msk [vmem:[#allocation3 + $0xe8] sm:$0xff] %vm204_vm0, %v1819_v27  ;;  %v655_v33 = vld [vmem:[#allocation3 + $0xf8] sm:$0xff]  ;;  %v646_v48 = vld [vmem:[#allocation3 + $0xb0] sm:$0xff] }
  0x8a   : > { %2205 = vmatpush3.bf16.msra.mxu1 %v2500_v61  ;;  %1095 = vmatprep.mubr.bf16.mxu0 %v645_v23  ;;  %503 = vst.msk [vmem:[#allocation3 + $0x170] sm:$0xff] %vm204_vm0, %v1820_v29  ;;  %466 = vst.msk [vmem:[#allocation3 + $0x190] sm:$0xff] %vm204_vm0, %v1820_v29  ;;  %v659_v42 = vld [vmem:[#allocation3 + $0x118] sm:$0xff]  ;;  %v672_v1 = vld [vmem:[#allocation3 + $0x180] sm:$0xff] }
  0x8b   : > { %2206 = vmatprep.subr.bf16.mxu1 %v2503_v63  ;;  %v1821_v30 = vld [vmem:[#allocation2 + $0x58] sm:$0xff]  ;;  %577 = vst.msk [vmem:[#allocation3 + $0x130] sm:$0xff] %vm204_vm0, %v1820_v29  ;;  %540 = vst.msk [vmem:[#allocation3 + $0x150] sm:$0xff] %vm204_vm0, %v1820_v29  ;;  %v638_v2 = vld [vmem:[#allocation3 + $0x70] sm:$0xff] }
  0x8c   : > { %614 = vst.msk [vmem:[#allocation3 + $0x110] sm:$0xff] %vm204_vm0, %v1820_v29  ;;  %504 = vst.msk [vmem:[#allocation3 + $0x198] sm:$0xff] %vm204_vm0, %v1821_v30  ;;  %v660_v37 = vld [vmem:[#allocation3 + $0x120] sm:$0xff]  ;;  %v665_v44 = vld [vmem:[#allocation3 + $0x148] sm:$0xff] }
  0x8d   : > { %1184 = vmatmul.mubr.bf16.gmra.mrb[12].mxu1 %v699_v6  ;;  %467 = vst.msk [vmem:[#allocation3 + $0x1b8] sm:$0xff] %vm204_vm0, %v1821_v30  ;;  %578 = vst.msk [vmem:[#allocation3 + $0x158] sm:$0xff] %vm204_vm0, %v1821_v30  ;;  %v647_v45 = vld [vmem:[#allocation3 + $0xb8] sm:$0xff]  ;;  %v664_v47 = vld [vmem:[#allocation3 + $0x140] sm:$0xff] }
  0x8e   : > { %2207 = vmatpush3.bf16.msra.mxu1 %v2504_v7  ;;  %1224 = vmatprep.mubr.bf16.mxu1 %v627_v9  ;;  %541 = vst.msk [vmem:[#allocation3 + $0x178] sm:$0xff] %vm204_vm0, %v1821_v30  ;;  %615 = vst.msk [vmem:[#allocation3 + $0x138] sm:$0xff] %vm204_vm0, %v1821_v30  ;;  %v652_v50 = vld [vmem:[#allocation3 + $0xe0] sm:$0xff]  ;;  %v669_v51 = vld [vmem:[#allocation3 + $0x168] sm:$0xff] }
  0x8f   : > { %2208 = vmatprep.subr.bf16.mxu1 %v2505_v8  ;;  %352 = vst.msk [vmem:[#allocation2 + $0x88] sm:$0xff] %vm204_vm0, %v2520_v39  ;;  %585 = vst.msk [vmem:[#allocation3 + $0x270] sm:$0xff] %vm204_vm0, %v1858_v40  ;;  %v651_v52 = vld [vmem:[#allocation3 + $0xd8] sm:$0xff]  ;;  %v657_v54 = vld [vmem:[#allocation3 + $0x108] sm:$0xff] }
  0x90   : > { %622 = vst.msk [vmem:[#allocation3 + $0x250] sm:$0xff] %vm204_vm0, %v1858_v40  ;;  %623 = vst.msk [vmem:[#allocation3 + $0x278] sm:$0xff] %vm204_vm0, %v1874_v41  ;;  %v656_v56 = vld [vmem:[#allocation3 + $0x100] sm:$0xff]  ;;  %v661_v60 = vld [vmem:[#allocation3 + $0x128] sm:$0xff] }
  0x91   : > { %1096 = vmatmul.mubr.bf16.gmra.mrb[16].mxu0 %v644_v21  ;;  %v670_v49 = vld [vmem:[#allocation3 + $0x170] sm:$0xff]  ;;  %v643_v4 = vld [vmem:[#allocation3 + $0x98] sm:$0xff]  ;;  %v648_v6 = vld [vmem:[#allocation3 + $0xc0] sm:$0xff] }
  0x92   : > { %2209 = vmatpush3.bf16.msra.mxu1 %v2507_v14  ;;  %1103 = vmatprep.mubr.bf16.mxu0 %v650_v28  ;;  %v674_v55 = vld [vmem:[#allocation3 + $0x190] sm:$0xff]  ;;  %v676_v7 = vld [vmem:[#allocation3 + $0x1a0] sm:$0xff]  ;;  %v653_v8 = vld [vmem:[#allocation3 + $0xe8] sm:$0xff] }
  0x93   : > { %v675_v53 = vld [vmem:[#allocation3 + $0x198] sm:$0xff]  ;;  %v662_v58 = vld [vmem:[#allocation3 + $0x130] sm:$0xff]  ;;  %v681_v11 = vld [vmem:[#allocation3 + $0x1c8] sm:$0xff] }
  0x94   : > { %v679_v59 = vld [vmem:[#allocation3 + $0x1b8] sm:$0xff]  ;;  %v666_v63 = vld [vmem:[#allocation3 + $0x150] sm:$0xff]  ;;  %v668_v14 = vld [vmem:[#allocation3 + $0x160] sm:$0xff] }
  0x95   : > { %1225 = vmatmul.mubr.bf16.vlgmr.msra.gmra.mrb[16].mxu1 %v626_v22  ;;  %v667_v61 = vld [vmem:[#allocation3 + $0x158] sm:$0xff]  ;;  %v682_v9 = vld [vmem:[#allocation3 + $0x1d0] sm:$0xff]  ;;  %v673_v16 = vld [vmem:[#allocation3 + $0x188] sm:$0xff] }
  0x96   : > { %1232 = vmatprep.mubr.bf16.mxu1 %v632_v24  ;;  %v1857_v46 = vld [vmem:[#allocation2 + $0x88] sm:$0xff]  ;;  %v671_v3 = vld [vmem:[#allocation3 + $0x178] sm:$0xff]  ;;  %v658_v10 = vld [vmem:[#allocation3 + $0x110] sm:$0xff] }
  0x97   : > { %584 = vst.msk [vmem:[#allocation3 + $0x248] sm:$0xff] %vm204_vm0, %v1857_v46  ;;  %621 = vst.msk [vmem:[#allocation3 + $0x228] sm:$0xff] %vm204_vm0, %v1857_v46  ;;  %v663_v12 = vld [vmem:[#allocation3 + $0x138] sm:$0xff]  ;;  %v686_v15 = vld [vmem:[#allocation3 + $0x1f0] sm:$0xff] }
  0x98   : > { %547 = vst.msk [vmem:[#allocation3 + $0x268] sm:$0xff] %vm204_vm0, %v1857_v46  ;;  %v692_v17 = vld [vmem:[#allocation3 + $0x220] sm:$0xff]  ;;  %v678_v18 = vld [vmem:[#allocation3 + $0x1b0] sm:$0xff]  ;;  %v691_v19 = vld [vmem:[#allocation3 + $0x218] sm:$0xff] }
  0x99   : > { %1104 = vmatmul.mubr.bf16.gmra.mrb[20].mxu0 %v649_v31  ;;  %v683_v20 = vld [vmem:[#allocation3 + $0x1d8] sm:$0xff]  ;;  %v688_v22 = vld [vmem:[#allocation3 + $0x200] sm:$0xff]  ;;  %v702_v25 = vld [vmem:[#allocation3 + $0x270] sm:$0xff] }
  0x9a   : > { %1111 = vmatprep.mubr.bf16.mxu0 %v655_v33  ;;  %v696_v23 = vld [vmem:[#allocation3 + $0x240] sm:$0xff]  ;;  %v698_v26 = vld [vmem:[#allocation3 + $0x250] sm:$0xff]  ;;  %v703_v28 = vld [vmem:[#allocation3 + $0x278] sm:$0xff] }
  0x9d   : > { %1233 = vmatmul.mubr.bf16.gmra.mrb[20].mxu1 %v631_v32 }
  0x9e   : > { %1240 = vmatprep.mubr.bf16.mxu1 %v637_v34  ;;  %v697_v21 = vld [vmem:[#allocation3 + $0x248] sm:$0xff] }
  0x9f   : > { %v693_v24 = vld [vmem:[#allocation3 + $0x228] sm:$0xff] }
  0xa0   : > { %v701_v27 = vld [vmem:[#allocation3 + $0x268] sm:$0xff] }
  0xa1   : > { %1112 = vmatmul.mubr.bf16.gmra.mrb[24].mxu0 %v654_v35 }
  0xa2   : > { %1119 = vmatprep.mubr.bf16.mxu0 %v660_v37 }
  0xa5   : > { %1241 = vmatmul.mubr.bf16.gmra.mrb[24].mxu1 %v636_v36 }
  0xa6   : > { %1248 = vmatprep.mubr.bf16.mxu1 %v642_v38 }
  0xa9   : > { %1120 = vmatmul.mubr.bf16.gmra.mrb[28].mxu0 %v659_v42 }
  0xaa   : > { %1127 = vmatprep.mubr.bf16.mxu0 %v665_v44 }
  0xad   : > { %1249 = vmatmul.mubr.bf16.gmra.mrb[28].mxu1 %v641_v43 }
  0xae   : > { %1256 = vmatprep.mubr.bf16.mxu1 %v647_v45 }
  0xb1   : > { %1128 = vmatmul.mubr.bf16.gmra.mrb[32].mxu0 %v664_v47 }
  0xb2   : > { %1135 = vmatprep.mubr.bf16.mxu0 %v670_v49 }
  0xb5   : > { %1257 = vmatmul.mubr.bf16.gmra.mrb[32].mxu1 %v646_v48 }
  0xb6   : > { %1264 = vmatprep.mubr.bf16.mxu1 %v652_v50 }
  0xb9   : > { %1136 = vmatmul.mubr.bf16.gmra.mrb[36].mxu0 %v669_v51 }
  0xba   : > { %1143 = vmatprep.mubr.bf16.mxu0 %v675_v53 }
  0xbd   : > { %1265 = vmatmul.mubr.bf16.gmra.mrb[36].mxu1 %v651_v52 }
  0xbe   : > { %1272 = vmatprep.mubr.bf16.mxu1 %v657_v54 }
  0xc1   : > { %1144 = vmatmul.mubr.bf16.gmra.mrb[40].mxu0 %v674_v55 }
  0xc2   : > { %1151 = vmatprep.mubr.bf16.mxu0 %v680_v57 }
  0xc5   : > { %1273 = vmatmul.mubr.bf16.gmra.mrb[40].mxu1 %v656_v56 }
  0xc6   : > { %1280 = vmatprep.mubr.bf16.mxu1 %v662_v58 }
  0xc9   : > { %1152 = vmatmul.mubr.bf16.gmra.mrb[44].mxu0 %v679_v59 }
  0xca   : > { %2346 = vmatprep.mubr.bf16.mxu0 %v628_v62 }
  0xcd   : > { %1281 = vmatmul.mubr.bf16.gmra.mrb[44].mxu1 %v661_v60 }
  0xce   : > { %1288 = vmatprep.mubr.bf16.mxu1 %v667_v61 }
  0xd1   : > { %2347 = vmatmul.mubr.bf16.vlgmr.msra.gmra.mrb[48].mxu0 %v633_v0 }
  0xd2   : > { %2350 = vmatprep.mubr.bf16.mxu0 %v638_v2 }
  0xd5   : > { %1289 = vmatmul.mubr.bf16.gmra.mrb[48].mxu1 %v666_v63 }
  0xd6   : > { %1296 = vmatprep.mubr.bf16.mxu1 %v672_v1 }
  0xd9   : > { %2351 = vmatmul.mubr.bf16.gmra.mrb[52].mxu0 %v643_v4 }
  0xda   : > { %2354 = vmatprep.mubr.bf16.mxu0 %v648_v6 }
  0xdd   : > { %1297 = vmatmul.mubr.bf16.gmra.mrb[52].mxu1 %v671_v3 }
  0xde   : > { %1304 = vmatprep.mubr.bf16.mxu1 %v677_v5 }
  0xe1   : > { %2355 = vmatmul.mubr.bf16.gmra.mrb[56].mxu0 %v653_v8 }
  0xe2   : > { %2358 = vmatprep.mubr.bf16.mxu0 %v658_v10 }
  0xe5   : > { %1305 = vmatmul.mubr.bf16.gmra.mrb[56].mxu1 %v676_v7 }
  0xe6   : > { %1312 = vmatprep.mubr.bf16.mxu1 %v682_v9 }
  0xe9   : > { %2359 = vmatmul.mubr.bf16.gmra.mrb[60].mxu0 %v663_v12 }
  0xea   : > { %2362 = vmatprep.mubr.bf16.mxu0 %v668_v14 }
  0xed   : > { %1313 = vmatmul.mubr.bf16.gmra.mrb[60].mxu1 %v681_v11 }
  0xee   : > { %1320 = vmatprep.mubr.bf16.mxu1 %v687_v13 }
  0xf1   : > { %2363 = vmatmul.mubr.bf16.gmra.mrb[64].mxu0 %v673_v16 }
  0xf2   : > { %2366 = vmatprep.mubr.bf16.mxu0 %v678_v18 }
  0xf5   : > { %1321 = vmatmul.mubr.bf16.gmra.mrb[64].mxu1 %v686_v15  ;;  %v2983_v15 = vld [vmem:[%s3185_s2] ss:$0 sm:$0xff] }
  0xf6   : > { %1328 = vmatprep.mubr.bf16.mxu1 %v692_v17 }
  0xf9   : > { %2367 = vmatmul.mubr.bf16.gmra.mrb[68].mxu0 %v683_v20 }
  0xfa   : > { %2370 = vmatprep.mubr.bf16.mxu0 %v688_v22 }
  0xfd   : > { %1329 = vmatmul.mubr.bf16.gmra.mrb[68].mxu1 %v691_v19 }
  0xfe   : > { %1336 = vmatprep.mubr.bf16.mxu1 %v697_v21 }
 0x101   : > { %2371 = vmatmul.mubr.bf16.gmra.mrb[72].mxu0 %v693_v24 }
 0x102   : > { %2374 = vmatprep.mubr.bf16.mxu0 %v698_v26 }
 0x105   : > { %1337 = vmatmul.mubr.bf16.gmra.mrb[72].mxu1 %v696_v23 }
 0x106   : > { %1344 = vmatprep.mubr.bf16.mxu1 %v702_v25 }
 0x109   : > { %2375 = vmatmul.mubr.bf16.gmra.mrb[76].mxu0 %v703_v28 }
 0x10d   : > { %1345 = vmatmul.mubr.bf16.gmra.mrb[76].mxu1 %v701_v27 }
 0x13e   : > { %v2098_v29 = vpop.f32.mrb[0].mxu0 }
 0x13f   : > { %v2099_v30 = vpop.f32.mrb[1].mxu0 }
 0x140   : > { %v2100_v32 = vadd.f32 %v2099_v30, %v2098_v29  ;;  %v2101_v33 = vpop.f32.mrb[2].mxu0 }
 0x141   : > { %v2102_v35 = vpop.f32.mrb[3].mxu0 }
 0x142   : > { %v2103_v38 = vadd.f32 %v2102_v35, %v2101_v33  ;;  %v1066_v18 = vadd.f32 %v2100_v32, %v2983_v15 }
 0x144   : > { %v1069_v25 = vadd.f32 %v2103_v38, %v2983_v15 }
 0x148   : > { %v2170_v31 = vpop.f32.mrb[0].mxu1 }
 0x149   : > { %v2171_v34 = vpop.f32.mrb[1].mxu1 }
 0x14a   : > { %v2960_v36 = vadd.f32 %v2171_v34, %v2170_v31  ;;  %v2173_v37 = vpop.f32.mrb[2].mxu1 }
 0x14b   : > { %v2174_v39 = vpop.f32.mrb[3].mxu1 }
 0x14c   : > { %v2962_v40 = vadd.f32 %v2174_v39, %v2173_v37  ;;  %v2104_v41 = vpop.f32.mrb[4].mxu0 }
 0x14d   : > { %v2105_v42 = vpop.f32.mrb[5].mxu0 }
 0x14e   : > { %v2106_v44 = vadd.f32 %v2105_v42, %v2104_v41  ;;  %v2107_v45 = vpop.f32.mrb[6].mxu0 }
 0x14f   : > { %v2108_v47 = vpop.f32.mrb[7].mxu0 }
 0x150   : > { %v2176_v43 = vpop.f32.mrb[4].mxu1  ;;  %v2109_v50 = vadd.f32 %v2108_v47, %v2107_v45  ;;  %v1074_v32 = vadd.f32 %v2106_v44, %v2983_v15 }
 0x151   : > { %v2177_v46 = vpop.f32.mrb[5].mxu1 }
 0x152   : > { %v2964_v48 = vadd.f32 %v2177_v46, %v2176_v43  ;;  %v2179_v49 = vpop.f32.mrb[6].mxu1  ;;  %v1077_v38 = vadd.f32 %v2109_v50, %v2983_v15 }
 0x153   : > { %v2180_v51 = vpop.f32.mrb[7].mxu1 }
 0x154   : > { %v2966_v52 = vadd.f32 %v2180_v51, %v2179_v49  ;;  %v2110_v53 = vpop.f32.mrb[8].mxu0 }
 0x155   : > { %v2111_v54 = vpop.f32.mrb[9].mxu0 }
 0x156   : > { %v2112_v56 = vadd.f32 %v2111_v54, %v2110_v53  ;;  %v2113_v57 = vpop.f32.mrb[10].mxu0 }
 0x157   : > { %v2114_v59 = vpop.f32.mrb[11].mxu0 }
 0x158   : > { %v2182_v55 = vpop.f32.mrb[8].mxu1  ;;  %v2115_v62 = vadd.f32 %v2114_v59, %v2113_v57  ;;  %v1082_v44 = vadd.f32 %v2112_v56, %v2983_v15 }
 0x159   : > { %v2183_v58 = vpop.f32.mrb[9].mxu1 }
 0x15a   : > { %v2968_v60 = vadd.f32 %v2183_v58, %v2182_v55  ;;  %v2185_v61 = vpop.f32.mrb[10].mxu1  ;;  %v1085_v50 = vadd.f32 %v2115_v62, %v2983_v15 }
 0x15b   : > { %v2186_v63 = vpop.f32.mrb[11].mxu1 }
 0x15c   : > { %v2970_v0 = vadd.f32 %v2186_v63, %v2185_v61  ;;  %v2116_v1 = vpop.f32.mrb[12].mxu0 }
 0x15d   : > { %v2117_v2 = vpop.f32.mrb[13].mxu0 }
 0x15e   : > { %v2972_v3 = vadd.f32 %v2117_v2, %v2116_v1  ;;  %v2119_v4 = vpop.f32.mrb[14].mxu0 }
 0x15f   : > { %v2120_v6 = vpop.f32.mrb[15].mxu0 }
 0x160   : > { %v2188_v5 = vpop.f32.mrb[12].mxu1  ;;  %v2974_v8 = vadd.f32 %v2120_v6, %v2119_v4  ;;  %v1090_v56 = vadd.f32 %v2972_v3, %v2983_v15 }
 0x161   : > { %v2189_v7 = vpop.f32.mrb[13].mxu1 }
 0x162   : > { %v2976_v9 = vadd.f32 %v2189_v7, %v2188_v5  ;;  %v2191_v10 = vpop.f32.mrb[14].mxu1  ;;  %v1093_v62 = vadd.f32 %v2974_v8, %v2983_v15 }
 0x163   : > { %v2192_v11 = vpop.f32.mrb[15].mxu1 }
 0x164   : > { %v2978_v12 = vadd.f32 %v2192_v11, %v2191_v10  ;;  %v2122_v14 = vpop.f32.mrb[16].mxu0 }
 0x165   : > { %v2123_v17 = vpop.f32.mrb[17].mxu0 }
 0x166   : > { %v2124_v21 = vadd.f32 %v2123_v17, %v2122_v14  ;;  %v2125_v22 = vpop.f32.mrb[18].mxu0 }
 0x167   : > { %v2126_v24 = vpop.f32.mrb[19].mxu0 }
 0x168   : > { %v2210_v13 = vpop.f32.mrb[16].mxu1  ;;  %v2127_v27 = vadd.f32 %v2126_v24, %v2125_v22  ;;  %v1098_v3 = vadd.f32 %v2124_v21, %v2983_v15 }
 0x169   : > { %v2211_v16 = vpop.f32.mrb[17].mxu1 }
 0x16a   : > { %v2212_v19 = vadd.f32 %v2211_v16, %v2210_v13  ;;  %v2213_v20 = vpop.f32.mrb[18].mxu1  ;;  %v1101_v8 = vadd.f32 %v2127_v27, %v2983_v15 }
 0x16b   : > { %v2214_v23 = vpop.f32.mrb[19].mxu1 }
 0x16c   : > { %v2215_v26 = vadd.f32 %v2214_v23, %v2213_v20  ;;  %v2987_v28 = vadd.f32 %v2212_v19, %v1066_v18  ;;  %v2128_v31 = vpop.f32.mrb[20].mxu0 }
 0x16d   : > { %v2129_v34 = vpop.f32.mrb[21].mxu0 }
 0x16e   : > { %v2989_v29 = vadd.f32 %v2215_v26, %v1069_v25  ;;  %v2130_v39 = vadd.f32 %v2129_v34, %v2128_v31  ;;  %v2131_v41 = vpop.f32.mrb[22].mxu0 }
 0x16f   : > { %v2132_v43 = vpop.f32.mrb[23].mxu0 }
 0x170   : > { %v2216_v30 = vpop.f32.mrb[20].mxu1  ;;  %v2133_v46 = vadd.f32 %v2132_v43, %v2131_v41 }
 0x171   : > { %v2217_v33 = vpop.f32.mrb[21].mxu1 }
 0x172   : > { %v2218_v35 = vadd.f32 %v2217_v33, %v2216_v30  ;;  %v2219_v37 = vpop.f32.mrb[22].mxu1 }
 0x173   : > { %v2220_v42 = vpop.f32.mrb[23].mxu1 }
 0x174   : > { %v2221_v45 = vadd.f32 %v2220_v42, %v2219_v37  ;;  %v2993_v47 = vadd.f32 %v2218_v35, %v1074_v32  ;;  %v2134_v53 = vpop.f32.mrb[24].mxu0 }
 0x175   : > { %v2135_v55 = vpop.f32.mrb[25].mxu0 }
 0x176   : > { %v2995_v49 = vadd.f32 %v2221_v45, %v1077_v38  ;;  %v2136_v59 = vadd.f32 %v2135_v55, %v2134_v53  ;;  %v2137_v61 = vpop.f32.mrb[26].mxu0 }
 0x177   : > { %v2138_v1 = vpop.f32.mrb[27].mxu0 }
 0x178   : > { %v2222_v51 = vpop.f32.mrb[24].mxu1  ;;  %v2139_v4 = vadd.f32 %v2138_v1, %v2137_v61 }
 0x179   : > { %v2223_v54 = vpop.f32.mrb[25].mxu1 }
 0x17a   : > { %v2224_v57 = vadd.f32 %v2223_v54, %v2222_v51  ;;  %v2225_v58 = vpop.f32.mrb[26].mxu1 }
 0x17b   : > { %v2226_v63 = vpop.f32.mrb[27].mxu1 }
 0x17c   : > { %v2227_v2 = vadd.f32 %v2226_v63, %v2225_v58  ;;  %v2999_v5 = vadd.f32 %v2224_v57, %v1082_v44  ;;  %v2140_v10 = vpop.f32.mrb[28].mxu0  ;;  %v1106_v44 = vadd.f32 %v2130_v39, %v2983_v15 }
 0x17d   : > { %v2141_v13 = vpop.f32.mrb[29].mxu0 }
 0x17e   : > { %v3001_v6 = vadd.f32 %v2227_v2, %v1085_v50  ;;  %v2142_v17 = vadd.f32 %v2141_v13, %v2140_v10  ;;  %v2143_v18 = vpop.f32.mrb[30].mxu0  ;;  %v1109_v50 = vadd.f32 %v2133_v46, %v2983_v15 }
 0x17f   : > { %v2144_v20 = vpop.f32.mrb[31].mxu0 }
 0x180   : > { %v2228_v7 = vpop.f32.mrb[28].mxu1  ;;  %v2145_v23 = vadd.f32 %v2144_v20, %v2143_v18 }
 0x181   : > { %v2229_v11 = vpop.f32.mrb[29].mxu1 }
 0x182   : > { %v2230_v14 = vadd.f32 %v2229_v11, %v2228_v7  ;;  %v2231_v16 = vpop.f32.mrb[30].mxu1 }
 0x183   : > { %v2232_v19 = vpop.f32.mrb[31].mxu1 }
 0x184   : > { %v2233_v22 = vadd.f32 %v2232_v19, %v2231_v16  ;;  %v3007_v24 = vadd.f32 %v2230_v14, %v1090_v56  ;;  %v2146_v30 = vpop.f32.mrb[32].mxu0  ;;  %v1114_v16 = vadd.f32 %v2136_v59, %v2983_v15 }
 0x185   : > { %v2147_v33 = vpop.f32.mrb[33].mxu0 }
 0x186   : > { %v3009_v25 = vadd.f32 %v2233_v22, %v1093_v62  ;;  %v3012_v35 = vadd.f32 %v2147_v33, %v2146_v30  ;;  %v2149_v37 = vpop.f32.mrb[34].mxu0 }
 0x187   : > { %v2150_v42 = vpop.f32.mrb[35].mxu0 }
 0x188   : > { %v2234_v26 = vpop.f32.mrb[32].mxu1  ;;  %v3015_v38 = vadd.f32 %v2150_v42, %v2149_v37 }
 0x189   : > { %v2235_v31 = vpop.f32.mrb[33].mxu1 }
 0x18a   : > { %v2236_v34 = vadd.f32 %v2235_v31, %v2234_v26  ;;  %v2237_v32 = vpop.f32.mrb[34].mxu1  ;;  %v1117_v26 = vadd.f32 %v2139_v4, %v2983_v15 }
 0x18b   : > { %v2238_v41 = vpop.f32.mrb[35].mxu1 }
 0x18c   : > { %v2239_v43 = vadd.f32 %v2238_v41, %v2237_v32  ;;  %v3017_v45 = vadd.f32 %v2236_v34, %v1098_v3  ;;  %v2152_v54 = vpop.f32.mrb[36].mxu0  ;;  %v1122_v41 = vadd.f32 %v2142_v17, %v2983_v15 }
 0x18d   : > { %v2153_v21 = vpop.f32.mrb[37].mxu0 }
 0x18e   : > { %v3019_v51 = vadd.f32 %v2239_v43, %v1101_v8  ;;  %v3022_v61 = vadd.f32 %v2153_v21, %v2152_v54  ;;  %v2155_v63 = vpop.f32.mrb[38].mxu0 }
 0x18f   : > { %v2156_v27 = vpop.f32.mrb[39].mxu0 }
 0x190   : > { %v2240_v53 = vpop.f32.mrb[36].mxu1  ;;  %v3025_v7 = vadd.f32 %v2156_v27, %v2155_v63 }
 0x191   : > { %v2241_v55 = vpop.f32.mrb[37].mxu1 }
 0x192   : > { %v2242_v57 = vadd.f32 %v2241_v55, %v2240_v53  ;;  %v2243_v58 = vpop.f32.mrb[38].mxu1  ;;  %v1125_v55 = vadd.f32 %v2145_v23, %v2983_v15 }
 0x193   : > { %v2244_v1 = vpop.f32.mrb[39].mxu1 }
 0x194   : > { %v2245_v2 = vadd.f32 %v2244_v1, %v2243_v58  ;;  %v3027_v10 = vadd.f32 %v2242_v57, %v1106_v44  ;;  %v2158_v56 = vpop.f32.mrb[40].mxu0 }
 0x195   : > { %v2159_v39 = vpop.f32.mrb[41].mxu0 }
 0x196   : > { %v3029_v11 = vadd.f32 %v2245_v2, %v1109_v50  ;;  %v3032_v20 = vadd.f32 %v2159_v39, %v2158_v56  ;;  %v2161_v62 = vpop.f32.mrb[42].mxu0  ;;  %v1130_v2 = vadd.f32 %v3012_v35, %v2983_v15 }
 0x197   : > { %v2162_v46 = vpop.f32.mrb[43].mxu0 }
 0x198   : > { %v2246_v13 = vpop.f32.mrb[40].mxu1  ;;  %v3035_v31 = vadd.f32 %v2162_v46, %v2161_v62 }
 0x199   : > { %v2247_v14 = vpop.f32.mrb[41].mxu1 }
 0x19a   : > { %v2248_v18 = vadd.f32 %v2247_v14, %v2246_v13  ;;  %v2249_v19 = vpop.f32.mrb[42].mxu1 }
 0x19b   : > { %v2250_v22 = vpop.f32.mrb[43].mxu1 }
 0x19c   : > { %v2251_v30 = vadd.f32 %v2250_v22, %v2249_v19  ;;  %v3037_v33 = vadd.f32 %v2248_v18, %v1114_v16  ;;  %v2164_v32 = vpop.f32.mrb[44].mxu0  ;;  %v1133_v19 = vadd.f32 %v3015_v38, %v2983_v15 }
 0x19d   : > { %v2165_v37 = vpop.f32.mrb[45].mxu0 }
 0x19e   : > { %v3039_v3 = vadd.f32 %v2251_v30, %v1117_v26  ;;  %v3042_v43 = vadd.f32 %v2165_v37, %v2164_v32  ;;  %v2167_v4 = vpop.f32.mrb[46].mxu0 }
 0x19f   : > { %v2168_v54 = vpop.f32.mrb[47].mxu0 }
 0x1a0   : > { %v2252_v34 = vpop.f32.mrb[44].mxu1  ;;  %v3045_v44 = vadd.f32 %v2168_v54, %v2167_v4 }
 0x1a1   : > { %v2253_v59 = vpop.f32.mrb[45].mxu1 }
 0x1a2   : > { %v2254_v42 = vadd.f32 %v2253_v59, %v2252_v34  ;;  %v2255_v8 = vpop.f32.mrb[46].mxu1 }
 0x1a3   : > { %v2256_v53 = vpop.f32.mrb[47].mxu1 }
 0x1a4   : > { %v2257_v21 = vadd.f32 %v2256_v53, %v2255_v8  ;;  %v3047_v57 = vadd.f32 %v2254_v42, %v1122_v41  ;;  %v2348_v17 = vpop.f32.mrb[48].mxu0  ;;  %v1141_v53 = vadd.f32 %v3025_v7, %v2983_v15 }
 0x1a5   : > { %v1396_v1 = vadd.f32 %v2348_v17, %v2993_v47  ;;  %v1387_v50 = vpop.f32.mrb[49].mxu0 }
 0x1a6   : > { %v3050_v58 = vadd.f32 %v2257_v21, %v1125_v55  ;;  %v1388_v13 = vadd.f32 %v1387_v50, %v2987_v28  ;;  %v2349_v14 = vpop.f32.mrb[50].mxu0  ;;  %v1146_v50 = vadd.f32 %v3032_v20, %v2983_v15 }
 0x1a7   : > { %v1399_v39 = vadd.f32 %v2349_v14, %v2995_v49  ;;  %v1390_v18 = vpop.f32.mrb[51].mxu0 }
 0x1a8   : > { %v2258_v63 = vpop.f32.mrb[48].mxu1  ;;  %v1391_v62 = vadd.f32 %v1390_v18, %v2989_v29  ;;  %v1138_v29 = vadd.f32 %v3022_v61, %v2983_v15 }
 0x1a9   : > { %v2259_v27 = vpop.f32.mrb[49].mxu1  ;;  %v1995_v46 = vpack.c.bf16 %v1399_v39, %v1396_v1  ;;  %v1149_v39 = vadd.f32 %v3035_v31, %v2983_v15 }
 0x1aa   : > { %v2260_v23 = vadd.f32 %v2259_v27, %v2258_v63  ;;  %v2261_v56 = vpop.f32.mrb[50].mxu1  ;;  %v1990_v26 = vpack.c.bf16 %v1391_v62, %v1388_v13 }
 0x1ab   : > { %v2262_v16 = vpop.f32.mrb[51].mxu1  ;;  %2067 = vst [vmem:[%s3066_s8 + $0x8] sm:$0xff] %v1995_v46  }
 0x1ac   : > { %v2263_v47 = vadd.f32 %v2262_v16, %v2261_v56  ;;  %v3062_v22 = vadd.f32 %v2260_v23, %v1130_v2  ;;  %1991 = vst [vmem:[%s3066_s8] sm:$0xff] %v1990_v26   ;;  %v2352_v49 = vpop.f32.mrb[52].mxu0 }
 0x1ad   : > { %v1412_v30 = vadd.f32 %v2352_v49, %v3007_v24  ;;  %v1403_v34 = vpop.f32.mrb[53].mxu0 }
 0x1ae   : > { %v3064_v35 = vadd.f32 %v2263_v47, %v1133_v19  ;;  %v1404_v59 = vadd.f32 %v1403_v34, %v2999_v5  ;;  %v2353_v41 = vpop.f32.mrb[54].mxu0 }
 0x1af   : > { %v1415_v42 = vadd.f32 %v2353_v41, %v3009_v25  ;;  %v1406_v4 = vpop.f32.mrb[55].mxu0 }
 0x1b0   : > { %v2264_v28 = vpop.f32.mrb[52].mxu1  ;;  %v1407_v54 = vadd.f32 %v1406_v4, %v3001_v6 }
 0x1b1   : > { %v2265_v38 = vpop.f32.mrb[53].mxu1  ;;  %v2005_v21 = vpack.c.bf16 %v1415_v42, %v1412_v30 }
 0x1b2   : > { %v2266_v32 = vadd.f32 %v2265_v38, %v2264_v28  ;;  %v2267_v37 = vpop.f32.mrb[54].mxu1  ;;  %v2000_v63 = vpack.c.bf16 %v1407_v54, %v1404_v59  ;;  %v1154_v28 = vadd.f32 %v3042_v43, %v2983_v15 }
 0x1b3   : > { %v2268_v8 = vpop.f32.mrb[55].mxu1  ;;  %2069 = vst [vmem:[%s3066_s8 + $0x18] sm:$0xff] %v2005_v21  }
 0x1b4   : > { %v2269_v24 = vadd.f32 %v2268_v8, %v2267_v37  ;;  %v1299_v55 = vadd.f32 %v2266_v32, %v1138_v29  ;;  %2068 = vst [vmem:[%s3066_s8 + $0x10] sm:$0xff] %v2000_v63   ;;  %v2356_v5 = vpop.f32.mrb[56].mxu0  ;;  %v1157_v32 = vadd.f32 %v3045_v44, %v2983_v15 }
 0x1b5   : > { %v1428_v1 = vadd.f32 %v2356_v5, %v3027_v10  ;;  %v1419_v25 = vpop.f32.mrb[57].mxu0 }
 0x1b6   : > { %v1302_v61 = vadd.f32 %v2269_v24, %v1141_v53  ;;  %v1420_v6 = vadd.f32 %v1419_v25, %v3017_v45  ;;  %v2357_v23 = vpop.f32.mrb[58].mxu0 }
 0x1b7   : > { %v1431_v13 = vadd.f32 %v2357_v23, %v3029_v11  ;;  %v1422_v14 = vpop.f32.mrb[59].mxu0 }
 0x1b8   : > { %v2270_v17 = vpop.f32.mrb[56].mxu1  ;;  %v1423_v16 = vadd.f32 %v1422_v14, %v3019_v51 }
 0x1b9   : > { %v2271_v27 = vpop.f32.mrb[57].mxu1  ;;  %v2015_v19 = vpack.c.bf16 %v1431_v13, %v1428_v1  ;;  %v1165_v1 = vadd.f32 %v2962_v40, %v2983_v15 }
 0x1ba   : > { %v2272_v7 = vadd.f32 %v2271_v27, %v2270_v17  ;;  %v2273_v2 = vpop.f32.mrb[58].mxu1  ;;  %v2010_v47 = vpack.c.bf16 %v1423_v16, %v1420_v6 }
 0x1bb   : > { %v2274_v56 = vpop.f32.mrb[59].mxu1  ;;  %2071 = vst [vmem:[%s3066_s8 + $0x28] sm:$0xff] %v2015_v19   ;;  %v1173_v19 = vadd.f32 %v2966_v52, %v2983_v15 }
 0x1bc   : > { %v2275_v10 = vadd.f32 %v2274_v56, %v2273_v2  ;;  %v1307_v18 = vadd.f32 %v2272_v7, %v1146_v50  ;;  %2070 = vst [vmem:[%s3066_s8 + $0x20] sm:$0xff] %v2010_v47   ;;  %v2360_v45 = vpop.f32.mrb[60].mxu0 }
 0x1bd   : > { %v1444_v46 = vadd.f32 %v2360_v45, %v3047_v57  ;;  %v1435_v11 = vpop.f32.mrb[61].mxu0 }
 0x1be   : > { %v1310_v20 = vadd.f32 %v2275_v10, %v1149_v39  ;;  %v1436_v51 = vadd.f32 %v1435_v11, %v3037_v33  ;;  %v2361_v30 = vpop.f32.mrb[62].mxu0 }
 0x1bf   : > { %v1447_v38 = vadd.f32 %v2361_v30, %v3050_v58  ;;  %v1438_v29 = vpop.f32.mrb[63].mxu0  ;;  %v1162_v58 = vadd.f32 %v2960_v36, %v2983_v15 }
 0x1c0   : > { %v2276_v62 = vpop.f32.mrb[60].mxu1  ;;  %v1439_v59 = vadd.f32 %v1438_v29, %v3039_v3 }
 0x1c1   : > { %v2277_v26 = vpop.f32.mrb[61].mxu1  ;;  %v2025_v41 = vpack.c.bf16 %v1447_v38, %v1444_v46 }
 0x1c2   : > { %v2278_v31 = vadd.f32 %v2277_v26, %v2276_v62  ;;  %v2279_v49 = vpop.f32.mrb[62].mxu1  ;;  %v2020_v42 = vpack.c.bf16 %v1439_v59, %v1436_v51 }
 0x1c3   : > { %v2280_v34 = vpop.f32.mrb[63].mxu1  ;;  %2073 = vst [vmem:[%s3066_s8 + $0x38] sm:$0xff] %v2025_v41  }
 0x1c4   : > { %v2281_v57 = vadd.f32 %v2280_v34, %v2279_v49  ;;  %v1315_v37 = vadd.f32 %v2278_v31, %v1154_v28  ;;  %2072 = vst [vmem:[%s3066_s8 + $0x30] sm:$0xff] %v2020_v42   ;;  %v2364_v33 = vpop.f32.mrb[64].mxu0  ;;  %v1178_v49 = vadd.f32 %v2968_v60, %v2983_v15 }
 0x1c5   : > { %v1460_v4 = vadd.f32 %v2364_v33, %v1299_v55  ;;  %v1451_v24 = vpop.f32.mrb[65].mxu0 }
 0x1c6   : > { %v1318_v43 = vadd.f32 %v2281_v57, %v1157_v32  ;;  %v1452_v54 = vadd.f32 %v1451_v24, %v3062_v22  ;;  %v2365_v21 = vpop.f32.mrb[66].mxu0  ;;  %v1181_v57 = vadd.f32 %v2970_v0, %v2983_v15  ;;  %v1186_v24 = vadd.f32 %v2976_v9, %v2983_v15 }
 0x1c7   : > { %v1463_v63 = vadd.f32 %v2365_v21, %v1302_v61  ;;  %v1454_v5 = vpop.f32.mrb[67].mxu0  ;;  %v1170_v61 = vadd.f32 %v2964_v48, %v2983_v15 }
 0x1c8   : > { %v2282_v8 = vpop.f32.mrb[64].mxu1  ;;  %v1455_v55 = vadd.f32 %v1454_v5, %v3064_v35 }
 0x1c9   : > { %v2283_v53 = vpop.f32.mrb[65].mxu1  ;;  %v2035_v50 = vpack.c.bf16 %v1463_v63, %v1460_v4  ;;  %v1189_v63 = vadd.f32 %v2978_v12, %v2983_v15 }
 0x1ca   : > { %v2284_v44 = vadd.f32 %v2283_v53, %v2282_v8  ;;  %v2285_v3 = vpop.f32.mrb[66].mxu1  ;;  %v2030_v7 = vpack.c.bf16 %v1455_v55, %v1452_v54 }
 0x1cb   : > { %v2286_v17 = vpop.f32.mrb[67].mxu1  ;;  %2075 = vst [vmem:[%s3066_s8 + $0x48] sm:$0xff] %v2035_v50  }
 0x1cc   : > { %v2287_v27 = vadd.f32 %v2286_v17, %v2285_v3  ;;  %v1323_v25 = vadd.f32 %v2284_v44, %v1162_v58  ;;  %2074 = vst [vmem:[%s3066_s8 + $0x40] sm:$0xff] %v2030_v7   ;;  %v2368_v2 = vpop.f32.mrb[68].mxu0 }
 0x1cd   : > { %v1476_v22 = vadd.f32 %v2368_v2, %v1315_v37  ;;  %v1467_v13 = vpop.f32.mrb[69].mxu0 }
 0x1ce   : > { %v1326_v6 = vadd.f32 %v2287_v27, %v1165_v1  ;;  %v1468_v56 = vadd.f32 %v1467_v13, %v1307_v18  ;;  %v2369_v35 = vpop.f32.mrb[70].mxu0 }
 0x1cf   : > { %v1479_v39 = vadd.f32 %v2369_v35, %v1318_v43  ;;  %v1470_v16 = vpop.f32.mrb[71].mxu0 }
 0x1d0   : > { %v2288_v36 = vpop.f32.mrb[68].mxu1  ;;  %v1471_v62 = vadd.f32 %v1470_v16, %v1310_v20 }
 0x1d1   : > { %v2289_v23 = vpop.f32.mrb[69].mxu1  ;;  %v2045_v46 = vpack.c.bf16 %v1479_v39, %v1476_v22 }
 0x1d2   : > { %v2290_v40 = vadd.f32 %v2289_v23, %v2288_v36  ;;  %v2291_v14 = vpop.f32.mrb[70].mxu1  ;;  %v2040_v26 = vpack.c.bf16 %v1471_v62, %v1468_v56 }
 0x1d3   : > { %v2292_v10 = vpop.f32.mrb[71].mxu1  ;;  %2077 = vst [vmem:[%s3066_s8 + $0x58] sm:$0xff] %v2045_v46  }
 0x1d4   : > { %v2293_v47 = vadd.f32 %v2292_v10, %v2291_v14  ;;  %v1331_v45 = vadd.f32 %v2290_v40, %v1170_v61  ;;  %2076 = vst [vmem:[%s3066_s8 + $0x50] sm:$0xff] %v2040_v26   ;;  %v2372_v28 = vpop.f32.mrb[72].mxu0 }
 0x1d5   : > { %v1483_v51 = vpop.f32.mrb[73].mxu0 }
 0x1d6   : > { %v1334_v11 = vadd.f32 %v2293_v47, %v1173_v19  ;;  %v1492_v31 = vadd.f32 %v2372_v28, %v1331_v45  ;;  %v1484_v52 = vadd.f32 %v1483_v51, %v1323_v25  ;;  %v2373_v20 = vpop.f32.mrb[74].mxu0 }
 0x1d7   : > { %v1486_v32 = vpop.f32.mrb[75].mxu0 }
 0x1d8   : > { %v2294_v48 = vpop.f32.mrb[72].mxu1  ;;  %v1495_v34 = vadd.f32 %v2373_v20, %v1334_v11  ;;  %v1487_v37 = vadd.f32 %v1486_v32, %v1326_v6 }
 0x1d9   : > { %v2295_v18 = vpop.f32.mrb[73].mxu1 }
 0x1da   : > { %v2296_v30 = vadd.f32 %v2295_v18, %v2294_v48  ;;  %v2297_v38 = vpop.f32.mrb[74].mxu1  ;;  %v2055_v42 = vpack.c.bf16 %v1495_v34, %v1492_v31  ;;  %v2050_v43 = vpack.c.bf16 %v1487_v37, %v1484_v52 }
 0x1db   : > { %v2298_v29 = vpop.f32.mrb[75].mxu1 }
 0x1dc   : > { %v2299_v59 = vadd.f32 %v2298_v29, %v2297_v38  ;;  %v1339_v41 = vadd.f32 %v2296_v30, %v1178_v49  ;;  %2079 = vst [vmem:[%s3066_s8 + $0x68] sm:$0xff] %v2055_v42   ;;  %2078 = vst [vmem:[%s3066_s8 + $0x60] sm:$0xff] %v2050_v43   ;;  %v2376_v33 = vpop.f32.mrb[76].mxu0 }
 0x1dd   : > { %v1499_v53 = vpop.f32.mrb[77].mxu0 }
 0x1de   : > { %v1342_v8 = vadd.f32 %v2299_v59, %v1181_v57  ;;  %v1500_v0 = vadd.f32 %v1499_v53, %v1339_v41  ;;  %v2377_v54 = vpop.f32.mrb[78].mxu0 }
 0x1df   : > { %v1502_v21 = vpop.f32.mrb[79].mxu0 }
 0x1e0   : > { %v2300_v60 = vpop.f32.mrb[76].mxu1  ;;  %v1503_v1 = vadd.f32 %v1502_v21, %v1342_v8 }
 0x1e1   : > { %v2301_v4 = vpop.f32.mrb[77].mxu1 }
 0x1e2   : > { %v2302_v58 = vadd.f32 %v2301_v4, %v2300_v60  ;;  %v2303_v44 = vpop.f32.mrb[78].mxu1  ;;  %v2060_v25 = vpack.c.bf16 %v1503_v1, %v1500_v0 }
 0x1e3   : > { %v2304_v3 = vpop.f32.mrb[79].mxu1 }
 0x1e4   : > { %v1347_v17 = vadd.f32 %v2302_v58, %v1186_v24  ;;  %v2305_v5 = vadd.f32 %v2304_v3, %v2303_v44  ;;  %2080 = vst [vmem:[%s3066_s8 + $0x70] sm:$0xff] %v2060_v25  }
 0x1e6   : > { %v1508_v27 = vadd.f32 %v2376_v33, %v1347_v17  ;;  %v1350_v55 = vadd.f32 %v2305_v5, %v1189_v63 }
 0x1e8   : > { %v1511_v9 = vadd.f32 %v2377_v54, %v1350_v55 }
 0x1ea   : > { %v2065_v12 = vpack.c.bf16 %v1511_v9, %v1508_v27 }
 0x1ec   : > { %2081 = vst [vmem:[%s3066_s8 + $0x78] sm:$0xff] %v2065_v12  }
 0x1ed   : > { %2562 = shalt.err (!%p2559_p6)
}
 0x1ee   : > { %s2563_s28 = scalar_lea.hbm %s3130_s19, 2048  ;;  %s2567_s4 = scalar_lea.hbm %s3186_s3, 4096 }
 0x1ef   : > { %p2564_p7 = scmp.ne.s32.totalorder %s3130_s19, %s2563_s28  ;;  %p2568_p0 = scmp.lt.u32.totalorder %s3130_s19, %s3186_s3 }
 0x1f0   : > { %p2569_p2 = scmp.lt.u32.totalorder %s2567_s4, %s2563_s28  ;;  %p2571_p8 = scmp.lt.u32.totalorder %s2563_s28, %s3130_s19 }
 0x1f1   : > { %p2565_p9 = pnand %p2564_p7, %p3198_p10 }
 0x1f2   : > { %p2570_p4 = por %p2569_p2, %p2568_p0 }
 0x1f3   : > { %p2566_p12 = pneg %p2565_p9 }
 0x1f4   : > { %p2572_p11 = por %p2571_p8, %p2570_p4 }
 0x1f6   : > { %p2573_p13 = pnand %p2572_p11, %p2566_p12 }
 0x1f8   : > { %2576 = shalt.err (!%p2573_p13)
}
 0x1f9   : > { %s2638_s7 = smov 64   ;;  %s2639_s8 = smov 4  }
 0x1fa   : > { %2398 = dma.vmem_to_hbm [thread:$0]  (%p3198_p10), %s3132_s10, 2048, %s3130_s19, %s3137_s21, %s2638_s7, %s2638_s7, %s2639_s8  }
 0x1fb PF: > { %p2410_p1 = scmp.ge.s32.totalorder %s2631_s17, 2  ;;  %s1705_s9 = sand.u32 1, %s2611_s12  }
 0x1fc   : > { %p3199_p3 = scmp.ne.s32.totalorder %s3192_s24, 0  ;;  %s1706_s11 = scalar_lea.sflag [#allocation6], %s1705_s9 }
 0x1fe   : > { %p2405_p5 = pnand %p2410_p1, %p3199_p3 }
 0x200   : > { %2606 = dma.done.wait (!%p2405_p5), %s1706_s11, 2048  }
 0x201   : > { %2608 = vsyncadd (!%p2405_p5), %s1706_s11, 4294965248  ;;  %s17_s17 = sadd.s32 1, %s2631_s17   ;;  %s3200_s12 = smov %s2615_s13 }
 0x202   : > { %p14_p6 = scmp.ge.s32.totalorder %s17_s17, 4   ;;  %s3201_s13 = smov %s2619_s14 }
 0x203   : > { %s3202_s14 = smov %s2713_s25  ;;  %s3203_s15 = smov %s2627_s16 }
 0x204   : > { %s3204_s16 = smov %s3206_s20  ;;  %16 = sbr.rel (!%p14_p6) target bundleno = 5 (0x5), region = 81 }
 0x20b   :  { %1711 = vsyncpa [#allocation5], 1 }
 0x20c   :  { %1713 = vsyncpa [#allocation5 + $0x1], 1 }
 0x20d   :  { %1714 = vsyncpa [#allocation6], 1 }
 0x20e   :  { %1716 = vsyncpa [#allocation6 + $0x1], 1 }

</bundles_post_ra>
